<compile_context>
chip_gen: v7x
topology: tpu7x:2x2x1
jax: 0.10.0
libtpu: 0.0.40
codegen_flags: <defaults>
</compile_context>

<pallas_src>
import jax
import jax.numpy as jnp
import numpy as np
from jax import lax
from jax.experimental import pallas as pl
from jax.experimental.pallas import tpu as pltpu


def _decoder_kernel(x_ref,                       # (T, Bt, D) bf16, time-major input tile
                    wih_ref, bih_ref,            # (D, 8H) bf16, (1, 8H) f32: fused input proj (fwd|bwd), b_ih+b_hh
                    whf_ref, whb_ref,            # (H, 4H) bf16: recurrent weights
                    wq_ref, bq_ref,              # (E, E) bf16 (scale folded in), (1, E) f32
                    wkv_ref, bkv_ref,            # (E, 2E) bf16, (1, 2E) f32: fused K|V proj
                    seg_ref, segT_ref,           # (E, nh), (nh, E) f32 head-segment matrices
                    wof_ref, bof_ref,            # (E, O_pad) bf16 folded out_proj@fc, (1, O_pad) f32
                    out_ref,                     # (Bt, O_pad) f32
                    xp_ref,                      # scratch (T*Bt, 8H) f32: hoisted input projections
                    enc_ref,                     # scratch (T*Bt, 2H) f32: bi-LSTM outputs [fwd|bwd]
                    kv_ref):                     # scratch (T*Bt, 2E) f32: fused K|V
    T, Bt, D = x_ref.shape
    G = whf_ref.shape[1]          # 4H
    H = G // 4
    E = 2 * H
    nh = seg_ref.shape[1]
    f32 = jnp.float32
    bf16 = jnp.bfloat16

    # ---- 1. Hoisted input projection: ONE (T*Bt, D) @ (D, 8H) matmul for both
    #         directions (bf16 operands, f32 accumulation).  Bt % 16 == 0 keeps
    #         the bf16 flatten tile-aligned (pure layout no-op).
    x_flat = x_ref[...].reshape(T * Bt, D)               # row r = t*Bt + b
    xp_ref[...] = jnp.dot(x_flat, wih_ref[...],
                          preferred_element_type=f32) + bih_ref[...]

    whf = whf_ref[...]
    whb = whb_ref[...]

    def cell(g, c):
        i = jax.nn.sigmoid(g[:, 0 * H:1 * H])
        f = jax.nn.sigmoid(g[:, 1 * H:2 * H])
        gg = jnp.tanh(g[:, 2 * H:3 * H])
        o = jax.nn.sigmoid(g[:, 3 * H:4 * H])
        c_new = f * c + i * gg
        return o * jnp.tanh(c_new), c_new

    # ---- 2. Interleaved fwd/bwd recurrences: two independent (Bt,H)x(H,4H)
    #         matmuls per step fill each other's MXU/EUP latency.
    def rec_step(s, carry):
        hf, cf, hb, cb = carry
        of = pl.multiple_of(s * Bt, Bt)
        ob = pl.multiple_of((T - 1 - s) * Bt, Bt)
        gf = xp_ref[pl.ds(of, Bt), 0:G] + jnp.dot(
            hf.astype(bf16), whf, preferred_element_type=f32)
        gb = xp_ref[pl.ds(ob, Bt), G:2 * G] + jnp.dot(
            hb.astype(bf16), whb, preferred_element_type=f32)
        hf, cf = cell(gf, cf)
        hb, cb = cell(gb, cb)
        enc_ref[pl.ds(of, Bt), 0:H] = hf
        enc_ref[pl.ds(ob, Bt), H:2 * H] = hb
        return hf, cf, hb, cb

    z = jnp.zeros((Bt, H), f32)
    _, cf_n, _, cb_n = lax.fori_loop(0, T, rec_step, (z, z, z, z))

    # ---- 3. Query from final cell states: cat(c_n[-1], c_n[-2]) = [c_bwd | c_fwd].
    hidden = jnp.concatenate([cb_n, cf_n], axis=-1)                        # (Bt, E)
    q = jnp.dot(hidden.astype(bf16), wq_ref[...],
                preferred_element_type=f32) + bq_ref[...]                  # (Bt, E), pre-scaled

    # ---- 4. Fused K|V projection: ONE (T*Bt, E) @ (E, 2E) matmul.
    kv_ref[...] = jnp.dot(enc_ref[...].astype(bf16), wkv_ref[...],
                          preferred_element_type=f32) + bkv_ref[...]

    seg = seg_ref[...]
    segT = segT_ref[...]

    # ---- 5. Online softmax streamed over time: no (T*Bt, ·) score/weight slabs.
    def att_step(t, carry):
        m, den, ctx = carry
        off = pl.multiple_of(t * Bt, Bt)
        k_t = kv_ref[pl.ds(off, Bt), 0:E]
        v_t = kv_ref[pl.ds(off, Bt), E:2 * E]
        # per-head score s[b,h] = <q_h[b], k_h[t,b]> via the binary seg matmul
        s_t = jnp.dot(k_t * q, seg, preferred_element_type=f32)            # (Bt, nh)
        m_new = jnp.maximum(m, s_t)
        alpha = jnp.exp(m - m_new)
        p = jnp.exp(s_t - m_new)
        den = alpha * den + p
        ctx = (jnp.dot(alpha, segT, preferred_element_type=f32) * ctx
               + jnp.dot(p, segT, preferred_element_type=f32) * v_t)       # (Bt, E)
        return m_new, den, ctx

    m0 = jnp.full((Bt, nh), -1e30, f32)
    d0 = jnp.zeros((Bt, nh), f32)
    a0 = jnp.zeros((Bt, E), f32)
    _, den, ctx = lax.fori_loop(0, T, att_step, (m0, d0, a0))

    inv = pl.reciprocal(jnp.dot(den, segT, preferred_element_type=f32), approx=True)
    ctx = ctx * inv

    # ---- 6. Folded out_proj @ output_layer: one matmul, lane-dense store.
    logits = jnp.dot(ctx.astype(bf16), wof_ref[...],
                     preferred_element_type=f32) + bof_ref[...]
    out_ref[...] = logits.astype(out_ref.dtype)


def _pick_block_b(B_pad, T, D, H, O_pad, budget_bytes):
    """Largest batch tile (multiple of 16, divisor of B_pad) whose VMEM working
    set fits the budget.  On v7x (2 TensorCores, 64 MiB VMEM) callers should
    pass block_b explicitly (or a smaller budget) to keep the grid >= 2."""
    E, G = 2 * H, 4 * H
    best = 16
    for bt in range(16, B_pad + 1, 16):
        if B_pad % bt:
            continue
        x_bytes = 2 * (T * bt * D * 2)                  # double-buffered bf16 input tile
        o_bytes = 2 * (bt * O_pad * 4)
        scr = T * bt * (2 * G + E + 2 * E) * 4          # xp + enc + kv scratch (f32)
        if x_bytes + o_bytes + scr <= budget_bytes:
            best = bt
    return best


def attentive_recurrent_decoder(inputs, params, num_heads,
                                input_lengths=None, block_b=None,
                                vmem_budget_bytes=40 << 20):
    """inputs: (B, T, input_dim) -> logits (B, output_dim).  Inference path only.
    `input_lengths` is accepted for API parity but (as in the PyTorch forward) unused."""
    del input_lengths
    B, T, D = inputs.shape
    H = params["w_hh_f"].shape[1]           # d_model
    E = 2 * H
    G = 4 * H
    O = params["fc_w"].shape[0]
    nh = num_heads
    assert E % nh == 0
    hd = E // nh
    scale = float(hd) ** -0.5

    f32, bf16 = jnp.float32, jnp.bfloat16
    O_pad = ((O + 127) // 128) * 128        # lane-dense final store; sliced off below

    # Pad batch to a multiple of 16 so bf16 flatten / all (Bt, .) tiles are aligned.
    B_pad = ((B + 15) // 16) * 16
    Bt = _pick_block_b(B_pad, T, D, H, O_pad, vmem_budget_bytes) if block_b is None else block_b
    assert B_pad % Bt == 0 and Bt % 16 == 0

    def row(v, dt=f32):
        return v.reshape(1, -1).astype(dt)

    # Fused input-projection weights (fwd|bwd), transposed to (in, out); b_ih + b_hh folded.
    wih = jnp.concatenate([params["w_ih_f"].T, params["w_ih_b"].T], axis=1).astype(bf16)   # (D, 8H)
    bih = row(jnp.concatenate([params["b_ih_f"] + params["b_hh_f"],
                               params["b_ih_b"] + params["b_hh_b"]]))                      # (1, 8H)
    whf = params["w_hh_f"].T.astype(bf16)   # (H, 4H)
    whb = params["w_hh_b"].T.astype(bf16)

    # Attention projections; softmax scale folded into Wq/bq; K|V fused.
    wq = (params["in_proj_w"][0:E].T * scale).astype(bf16)
    bq = row(params["in_proj_b"][0:E] * scale)
    wkv = jnp.concatenate([params["in_proj_w"][E:2 * E].T,
                           params["in_proj_w"][2 * E:3 * E].T], axis=1).astype(bf16)       # (E, 2E)
    bkv = row(jnp.concatenate([params["in_proj_b"][E:2 * E],
                               params["in_proj_b"][2 * E:3 * E]]))                         # (1, 2E)

    # Fold out_proj into the output layer offline (exact f32 fold), pad O to 128 lanes.
    wof = jnp.dot(params["out_proj_w"].T, params["fc_w"].T,
                  precision=lax.Precision.HIGHEST)                                         # (E, O)
    bof = (jnp.dot(params["out_proj_b"].reshape(1, E), params["fc_w"].T,
                   precision=lax.Precision.HIGHEST) + params["fc_b"].reshape(1, O))
    wof = jnp.pad(wof, ((0, 0), (0, O_pad - O))).astype(bf16)
    bof = jnp.pad(bof, ((0, 0), (0, O_pad - O))).astype(f32)

    # Binary head-segment matrices (exact 0/1 values).
    seg = (jnp.arange(E)[:, None] // hd == jnp.arange(nh)[None, :]).astype(f32)            # (E, nh)
    segT = seg.T

    # time-major, batch-padded, bf16 (halves HBM->VMEM DMA for x)
    x_tm = jnp.swapaxes(inputs, 0, 1).astype(bf16)                                         # (T, B, D)
    if B_pad != B:
        x_tm = jnp.pad(x_tm, ((0, 0), (0, B_pad - B), (0, 0)))

    ins = (x_tm, wih, bih, whf, whb, wq, bq, wkv, bkv, seg, segT, wof, bof)

    def const2d(a):
        return pl.BlockSpec(a.shape, lambda b: (0, 0))

    in_specs = ([pl.BlockSpec((T, Bt, D), lambda b: (0, b, 0))]
                + [const2d(a) for a in ins[1:]])
    out_specs = pl.BlockSpec((Bt, O_pad), lambda b: (b, 0))

    scratch = [
        pltpu.VMEM((T * Bt, 2 * G), f32),   # hoisted input projections (fwd|bwd)
        pltpu.VMEM((T * Bt, E), f32),       # bi-LSTM outputs [fwd | bwd]
        pltpu.VMEM((T * Bt, 2 * E), f32),   # fused K | V
    ]

    Bp = B_pad
    flops = int(2 * T * Bp * D * (2 * G)            # fused input projection
                + 2 * 2 * T * Bp * H * G            # recurrent matmuls, both dirs
                + 2 * T * Bp * E * (2 * E)          # fused K|V projection
                + 2 * Bp * E * E                    # q projection
                + 2 * Bp * E * O_pad                # folded output matmul
                + 2 * T * Bp * 3 * E * nh)          # per-step score / head-broadcast matmuls
    transc = int(2 * T * Bp * 5 * H + 2 * T * Bp * nh + Bp * E)
    bytes_acc = int(Bp * O_pad * 4
                    + sum(int(a.size) * a.dtype.itemsize for a in ins))

    out = pl.pallas_call(
        _decoder_kernel,
        out_shape=jax.ShapeDtypeStruct((B_pad, O_pad), f32),
        grid_spec=pltpu.PrefetchScalarGridSpec(
            num_scalar_prefetch=0,
            grid=(B_pad // Bt,),
            in_specs=in_specs,
            out_specs=out_specs,
            scratch_shapes=scratch,
        ),
        compiler_params=pltpu.CompilerParams(
            dimension_semantics=("parallel",),
            vmem_limit_bytes=64 * 1024 * 1024),
        cost_estimate=pl.CostEstimate(
            flops=flops, transcendentals=transc, bytes_accessed=bytes_acc),
    )(*ins)
    return out[:B, :O]


# ----------------------------- pure-JAX reference -----------------------------
def reference(inputs, params, num_heads):
    B, T, D = inputs.shape
    H = params["w_hh_f"].shape[1]
    E = 2 * H
    nh = num_heads
    hd = E // nh
    scale = float(hd) ** -0.5

    def run_dir(wih, whh, bih, bhh, reverse):
        def step(carry, xt):
            h, c = carry
            g = xt @ wih.T + bih + h @ whh.T + bhh
            i, f, gg, o = jnp.split(g, 4, axis=-1)
            c = jax.nn.sigmoid(f) * c + jax.nn.sigmoid(i) * jnp.tanh(gg)
            h = jax.nn.sigmoid(o) * jnp.tanh(c)
            return (h, c), h
        xs = jnp.swapaxes(inputs, 0, 1)
        if reverse:
            xs = xs[::-1]
        (h, c), hs = lax.scan(
            step, (jnp.zeros((B, H), jnp.float32), jnp.zeros((B, H), jnp.float32)), xs)
        if reverse:
            hs = hs[::-1]
        return jnp.swapaxes(hs, 0, 1), c

    out_f, c_f = run_dir(params["w_ih_f"], params["w_hh_f"],
                         params["b_ih_f"], params["b_hh_f"], reverse=False)
    out_b, c_b = run_dir(params["w_ih_b"], params["w_hh_b"],
                         params["b_ih_b"], params["b_hh_b"], reverse=True)
    outputs = jnp.concatenate([out_f, out_b], axis=-1)        # (B, T, E)
    hidden = jnp.concatenate([c_b, c_f], axis=-1)             # cat(c_n[-1], c_n[-2])

    wq, wk, wv = (params["in_proj_w"][0:E],
                  params["in_proj_w"][E:2 * E],
                  params["in_proj_w"][2 * E:3 * E])
    bq, bk, bv = (params["in_proj_b"][0:E],
                  params["in_proj_b"][E:2 * E],
                  params["in_proj_b"][2 * E:3 * E])
    q = (hidden @ wq.T + bq) * scale                          # (B, E)
    k = outputs @ wk.T + bk                                   # (B, T, E)
    v = outputs @ wv.T + bv
    qh = q.reshape(B, nh, hd)
    kh = k.reshape(B, T, nh, hd)
    vh = v.reshape(B, T, nh, hd)
    s = jnp.einsum("bhd,bthd->bht", qh, kh)
    p = jax.nn.softmax(s, axis=-1)
    ctx = jnp.einsum("bht,bthd->bhd", p, vh).reshape(B, E)
    ctx = ctx @ params["out_proj_w"].T + params["out_proj_b"]
    return ctx @ params["fc_w"].T + params["fc_b"]


if __name__ == "__main__":
    B, T = 2, 8
    input_dim = 16
    d_model = 16          # -> embed_dim E = 32
    num_heads = 8
    output_dim = 8

    H, E = d_model, 2 * d_model
    key = jax.random.PRNGKey(0)
    ks = jax.random.split(key, 16)

    def rnd(k, shape, s=0.1):
        return s * jax.random.normal(k, shape, jnp.float32)

    params = {
        "w_ih_f": rnd(ks[0], (4 * H, input_dim)),
        "w_hh_f": rnd(ks[1], (4 * H, H)),
        "b_ih_f": rnd(ks[2], (4 * H,)),
        "b_hh_f": rnd(ks[3], (4 * H,)),
        "w_ih_b": rnd(ks[4], (4 * H, input_dim)),
        "w_hh_b": rnd(ks[5], (4 * H, H)),
        "b_ih_b": rnd(ks[6], (4 * H,)),
        "b_hh_b": rnd(ks[7], (4 * H,)),
        "in_proj_w": rnd(ks[8], (3 * E, E)),
        "in_proj_b": rnd(ks[9], (3 * E,)),
        "out_proj_w": rnd(ks[10], (E, E)),
        "out_proj_b": rnd(ks[11], (E,)),
        "fc_w": rnd(ks[12], (output_dim, E)),
        "fc_b": rnd(ks[13], (output_dim,)),
    }
    inputs = jax.random.normal(ks[14], (B, T, input_dim), jnp.float32)
    input_lengths = jnp.full((B,), T, jnp.int32)   # unused by forward (API parity)

    out = attentive_recurrent_decoder(inputs, params, num_heads,
                                      input_lengths=input_lengths)
    out = jax.block_until_ready(out)

    ref = jax.block_until_ready(reference(inputs, params, num_heads))
    assert out.shape == (B, output_dim)
    np.testing.assert_allclose(np.asarray(out), np.asarray(ref), rtol=2e-3, atol=2e-3)
    print("KERNEL_OK")
</pallas_src>

<mosaic_0001>
module attributes {stable_mosaic.version = 11 : i64} {
  func.func @_decoder_kernel(%arg0: i32, %arg1: memref<8x16x16xbf16, #tpu.memory_space<vmem>>, %arg2: memref<16x128xbf16, #tpu.memory_space<vmem>>, %arg3: memref<1x128xf32, #tpu.memory_space<vmem>>, %arg4: memref<16x64xbf16, #tpu.memory_space<vmem>>, %arg5: memref<16x64xbf16, #tpu.memory_space<vmem>>, %arg6: memref<32x32xbf16, #tpu.memory_space<vmem>>, %arg7: memref<1x32xf32, #tpu.memory_space<vmem>>, %arg8: memref<32x64xbf16, #tpu.memory_space<vmem>>, %arg9: memref<1x64xf32, #tpu.memory_space<vmem>>, %arg10: memref<32x8xf32, #tpu.memory_space<vmem>>, %arg11: memref<8x32xf32, #tpu.memory_space<vmem>>, %arg12: memref<32x128xbf16, #tpu.memory_space<vmem>>, %arg13: memref<1x128xf32, #tpu.memory_space<vmem>>, %arg14: memref<16x128xf32, #tpu.memory_space<vmem>>, %arg15: memref<128x128xf32, #tpu.memory_space<vmem>>, %arg16: memref<128x32xf32, #tpu.memory_space<vmem>>, %arg17: memref<128x64xf32, #tpu.memory_space<vmem>>) attributes {dimension_semantics = [#tpu.dimension_semantics<parallel>], iteration_bounds = array<i64: 1>, scalar_prefetch = 0 : i64, scratch_operands = 3 : i64, tpu.core_type = #tpu.core_type<tc>, window_params = [{transform_indices = @transform_0, window_bounds = array<i64: 8, 16, 16>}, {pipeline_mode = #tpu.pipeline_mode<synchronous>, transform_indices = @transform_1, window_bounds = array<i64: 16, 128>}, {pipeline_mode = #tpu.pipeline_mode<synchronous>, transform_indices = @transform_2, window_bounds = array<i64: 1, 128>}, {pipeline_mode = #tpu.pipeline_mode<synchronous>, transform_indices = @transform_3, window_bounds = array<i64: 16, 64>}, {pipeline_mode = #tpu.pipeline_mode<synchronous>, transform_indices = @transform_4, window_bounds = array<i64: 16, 64>}, {pipeline_mode = #tpu.pipeline_mode<synchronous>, transform_indices = @transform_5, window_bounds = array<i64: 32, 32>}, {pipeline_mode = #tpu.pipeline_mode<synchronous>, transform_indices = @transform_6, window_bounds = array<i64: 1, 32>}, {pipeline_mode = #tpu.pipeline_mode<synchronous>, transform_indices = @transform_7, window_bounds = array<i64: 32, 64>}, {pipeline_mode = #tpu.pipeline_mode<synchronous>, transform_indices = @transform_8, window_bounds = array<i64: 1, 64>}, {pipeline_mode = #tpu.pipeline_mode<synchronous>, transform_indices = @transform_9, window_bounds = array<i64: 32, 8>}, {pipeline_mode = #tpu.pipeline_mode<synchronous>, transform_indices = @transform_10, window_bounds = array<i64: 8, 32>}, {pipeline_mode = #tpu.pipeline_mode<synchronous>, transform_indices = @transform_11, window_bounds = array<i64: 32, 128>}, {pipeline_mode = #tpu.pipeline_mode<synchronous>, transform_indices = @transform_12, window_bounds = array<i64: 1, 128>}, {transform_indices = @transform_13, window_bounds = array<i64: 16, 128>}]} {
    %c0 = arith.constant 0 : index
    %c0_0 = arith.constant 0 : index
    %c0_1 = arith.constant 0 : index
    %0 = vector.load %arg1[%c0, %c0_0, %c0_1] : memref<8x16x16xbf16, #tpu.memory_space<vmem>>, vector<8x16x16xbf16>
    %1 = vector.shape_cast %0 : vector<8x16x16xbf16> to vector<128x16xbf16>
    %c0_2 = arith.constant 0 : index
    %c0_3 = arith.constant 0 : index
    %2 = vector.load %arg2[%c0_2, %c0_3] : memref<16x128xbf16, #tpu.memory_space<vmem>>, vector<16x128xbf16>
    %cst = arith.constant dense<0.000000e+00> : vector<128x128xf32>
    %3 = tpu.matmul %1, %2, %cst {dimension_numbers = #tpu.dot_dimension_numbers<[1], [0], [0], [1], [0, 0, 1, 1], [], []>} : vector<128x16xbf16>, vector<16x128xbf16>, vector<128x128xf32> -> vector<128x128xf32>
    %c0_4 = arith.constant 0 : index
    %c0_5 = arith.constant 0 : index
    %4 = vector.load %arg3[%c0_4, %c0_5] : memref<1x128xf32, #tpu.memory_space<vmem>>, vector<1x128xf32>
    %5 = vector.broadcast %4 : vector<1x128xf32> to vector<128x128xf32>
    %6 = arith.addf %3, %5 : vector<128x128xf32>
    %c0_6 = arith.constant 0 : index
    %c0_7 = arith.constant 0 : index
    %7 = vector.load %arg15[%c0_6, %c0_7] : memref<128x128xf32, #tpu.memory_space<vmem>>, vector<128x128xf32>
    tpu.vector_store %arg15[%c0_6, %c0_7], %6 {strides = array<i32>} : memref<128x128xf32, #tpu.memory_space<vmem>>, vector<128x128xf32>,
    %c0_8 = arith.constant 0 : index
    %c0_9 = arith.constant 0 : index
    %8 = vector.load %arg4[%c0_8, %c0_9] : memref<16x64xbf16, #tpu.memory_space<vmem>>, vector<16x64xbf16>
    %c0_10 = arith.constant 0 : index
    %c0_11 = arith.constant 0 : index
    %9 = vector.load %arg5[%c0_10, %c0_11] : memref<16x64xbf16, #tpu.memory_space<vmem>>, vector<16x64xbf16>
    %cst_12 = arith.constant 0.000000e+00 : f32
    %10 = vector.broadcast %cst_12 : f32 to vector<16x16xf32>
    %c0_i32 = arith.constant 0 : i32
    %c8_i32 = arith.constant 8 : i32
    %11 = arith.addi %c0_i32, %c8_i32 : i32
    %c1_i32 = arith.constant 1 : i32
    %12:4 = scf.for %arg18 = %c0_i32 to %11 step %c1_i32 iter_args(%arg19 = %10, %arg20 = %10, %arg21 = %10, %arg22 = %10) -> (vector<16x16xf32>, vector<16x16xf32>, vector<16x16xf32>, vector<16x16xf32>)  : i32 {
      %c16_i32 = arith.constant 16 : i32
      %45 = arith.muli %arg18, %c16_i32 : i32
      %46 = tpu.assume_multiple %45, 16 : i32
      %c7_i32 = arith.constant 7 : i32
      %47 = arith.subi %c7_i32, %arg18 : i32
      %c16_i32_47 = arith.constant 16 : i32
      %48 = arith.muli %47, %c16_i32_47 : i32
      %49 = tpu.assume_multiple %48, 16 : i32
      %50 = arith.index_cast %46 : i32 to index
      %c0_48 = arith.constant 0 : index
      %51 = vector.load %arg15[%50, %c0_48] : memref<128x128xf32, #tpu.memory_space<vmem>>, vector<16x64xf32>
      %52 = arith.truncf %arg19 : vector<16x16xf32> to vector<16x16xbf16>
      %cst_49 = arith.constant dense<0.000000e+00> : vector<16x64xf32>
      %53 = tpu.matmul %52, %8, %cst_49 {dimension_numbers = #tpu.dot_dimension_numbers<[1], [0], [0], [1], [0, 0, 1, 1], [], []>} : vector<16x16xbf16>, vector<16x64xbf16>, vector<16x64xf32> -> vector<16x64xf32>
      %54 = arith.addf %51, %53 : vector<16x64xf32>
      %55 = arith.index_cast %49 : i32 to index
      %c64 = arith.constant 64 : index
      %56 = vector.load %arg15[%55, %c64] : memref<128x128xf32, #tpu.memory_space<vmem>>, vector<16x64xf32>
      %57 = arith.truncf %arg21 : vector<16x16xf32> to vector<16x16xbf16>
      %cst_50 = arith.constant dense<0.000000e+00> : vector<16x64xf32>
      %58 = tpu.matmul %57, %9, %cst_50 {dimension_numbers = #tpu.dot_dimension_numbers<[1], [0], [0], [1], [0, 0, 1, 1], [], []>} : vector<16x16xbf16>, vector<16x64xbf16>, vector<16x64xf32> -> vector<16x64xf32>
      %59 = arith.addf %56, %58 : vector<16x64xf32>
      %60 = vector.extract_strided_slice %54 {offsets = [0, 0], sizes = [16, 16], strides = [1, 1]} : vector<16x64xf32> to vector<16x16xf32>
      %61 = arith.negf %60 : vector<16x16xf32>
      %62 = math.exp %61 : vector<16x16xf32>
      %cst_51 = arith.constant 1.000000e+00 : f32
      %63 = vector.broadcast %cst_51 : f32 to vector<16x16xf32>
      %64 = arith.addf %63, %62 : vector<16x16xf32>
      %65 = arith.divf %63, %64 : vector<16x16xf32>
      %66 = vector.extract_strided_slice %54 {offsets = [0, 16], sizes = [16, 16], strides = [1, 1]} : vector<16x64xf32> to vector<16x16xf32>
      %67 = arith.negf %66 : vector<16x16xf32>
      %68 = math.exp %67 : vector<16x16xf32>
      %cst_52 = arith.constant 1.000000e+00 : f32
      %69 = vector.broadcast %cst_52 : f32 to vector<16x16xf32>
      %70 = arith.addf %69, %68 : vector<16x16xf32>
      %71 = arith.divf %69, %70 : vector<16x16xf32>
      %72 = vector.extract_strided_slice %54 {offsets = [0, 32], sizes = [16, 16], strides = [1, 1]} : vector<16x64xf32> to vector<16x16xf32>
      %73 = math.tanh %72 : vector<16x16xf32>
      %74 = vector.extract_strided_slice %54 {offsets = [0, 48], sizes = [16, 16], strides = [1, 1]} : vector<16x64xf32> to vector<16x16xf32>
      %75 = arith.negf %74 : vector<16x16xf32>
      %76 = math.exp %75 : vector<16x16xf32>
      %cst_53 = arith.constant 1.000000e+00 : f32
      %77 = vector.broadcast %cst_53 : f32 to vector<16x16xf32>
      %78 = arith.addf %77, %76 : vector<16x16xf32>
      %79 = arith.divf %77, %78 : vector<16x16xf32>
      %80 = arith.mulf %71, %arg20 : vector<16x16xf32>
      %81 = arith.mulf %65, %73 : vector<16x16xf32>
      %82 = arith.addf %80, %81 : vector<16x16xf32>
      %83 = math.tanh %82 : vector<16x16xf32>
      %84 = arith.mulf %79, %83 : vector<16x16xf32>
      %85 = vector.extract_strided_slice %59 {offsets = [0, 0], sizes = [16, 16], strides = [1, 1]} : vector<16x64xf32> to vector<16x16xf32>
      %86 = arith.negf %85 : vector<16x16xf32>
      %87 = math.exp %86 : vector<16x16xf32>
      %cst_54 = arith.constant 1.000000e+00 : f32
      %88 = vector.broadcast %cst_54 : f32 to vector<16x16xf32>
      %89 = arith.addf %88, %87 : vector<16x16xf32>
      %90 = arith.divf %88, %89 : vector<16x16xf32>
      %91 = vector.extract_strided_slice %59 {offsets = [0, 16], sizes = [16, 16], strides = [1, 1]} : vector<16x64xf32> to vector<16x16xf32>
      %92 = arith.negf %91 : vector<16x16xf32>
      %93 = math.exp %92 : vector<16x16xf32>
      %cst_55 = arith.constant 1.000000e+00 : f32
      %94 = vector.broadcast %cst_55 : f32 to vector<16x16xf32>
      %95 = arith.addf %94, %93 : vector<16x16xf32>
      %96 = arith.divf %94, %95 : vector<16x16xf32>
      %97 = vector.extract_strided_slice %59 {offsets = [0, 32], sizes = [16, 16], strides = [1, 1]} : vector<16x64xf32> to vector<16x16xf32>
      %98 = math.tanh %97 : vector<16x16xf32>
      %99 = vector.extract_strided_slice %59 {offsets = [0, 48], sizes = [16, 16], strides = [1, 1]} : vector<16x64xf32> to vector<16x16xf32>
      %100 = arith.negf %99 : vector<16x16xf32>
      %101 = math.exp %100 : vector<16x16xf32>
      %cst_56 = arith.constant 1.000000e+00 : f32
      %102 = vector.broadcast %cst_56 : f32 to vector<16x16xf32>
      %103 = arith.addf %102, %101 : vector<16x16xf32>
      %104 = arith.divf %102, %103 : vector<16x16xf32>
      %105 = arith.mulf %96, %arg22 : vector<16x16xf32>
      %106 = arith.mulf %90, %98 : vector<16x16xf32>
      %107 = arith.addf %105, %106 : vector<16x16xf32>
      %108 = math.tanh %107 : vector<16x16xf32>
      %109 = arith.mulf %104, %108 : vector<16x16xf32>
      %110 = arith.index_cast %46 : i32 to index
      %c0_57 = arith.constant 0 : index
      %111 = vector.load %arg16[%110, %c0_57] : memref<128x32xf32, #tpu.memory_space<vmem>>, vector<16x16xf32>
      tpu.vector_store %arg16[%110, %c0_57], %84 {strides = array<i32>} : memref<128x32xf32, #tpu.memory_space<vmem>>, vector<16x16xf32>,
      %112 = arith.index_cast %49 : i32 to index
      %c16 = arith.constant 16 : index
      %113 = vector.load %arg16[%112, %c16] : memref<128x32xf32, #tpu.memory_space<vmem>>, vector<16x16xf32>
      tpu.vector_store %arg16[%112, %c16], %109 {strides = array<i32>} : memref<128x32xf32, #tpu.memory_space<vmem>>, vector<16x16xf32>,
      scf.yield %84, %82, %109, %107 : vector<16x16xf32>, vector<16x16xf32>, vector<16x16xf32>, vector<16x16xf32>
    }
    %c8_i32_13 = arith.constant 8 : i32
    %13 = tpu.concatenate %12#3, %12#1 in 1 : vector<16x16xf32>, vector<16x16xf32> -> vector<16x32xf32>
    %14 = arith.truncf %13 : vector<16x32xf32> to vector<16x32xbf16>
    %c0_14 = arith.constant 0 : index
    %c0_15 = arith.constant 0 : index
    %15 = vector.load %arg6[%c0_14, %c0_15] : memref<32x32xbf16, #tpu.memory_space<vmem>>, vector<32x32xbf16>
    %cst_16 = arith.constant dense<0.000000e+00> : vector<16x32xf32>
    %16 = tpu.matmul %14, %15, %cst_16 {dimension_numbers = #tpu.dot_dimension_numbers<[1], [0], [0], [1], [0, 0, 1, 1], [], []>} : vector<16x32xbf16>, vector<32x32xbf16>, vector<16x32xf32> -> vector<16x32xf32>
    %c0_17 = arith.constant 0 : index
    %c0_18 = arith.constant 0 : index
    %17 = vector.load %arg7[%c0_17, %c0_18] : memref<1x32xf32, #tpu.memory_space<vmem>>, vector<1x32xf32>
    %18 = vector.broadcast %17 : vector<1x32xf32> to vector<16x32xf32>
    %19 = arith.addf %16, %18 : vector<16x32xf32>
    %c0_19 = arith.constant 0 : index
    %c0_20 = arith.constant 0 : index
    %20 = vector.load %arg16[%c0_19, %c0_20] : memref<128x32xf32, #tpu.memory_space<vmem>>, vector<128x32xf32>
    %21 = arith.truncf %20 : vector<128x32xf32> to vector<128x32xbf16>
    %c0_21 = arith.constant 0 : index
    %c0_22 = arith.constant 0 : index
    %22 = vector.load %arg8[%c0_21, %c0_22] : memref<32x64xbf16, #tpu.memory_space<vmem>>, vector<32x64xbf16>
    %cst_23 = arith.constant dense<0.000000e+00> : vector<128x64xf32>
    %23 = tpu.matmul %21, %22, %cst_23 {dimension_numbers = #tpu.dot_dimension_numbers<[1], [0], [0], [1], [0, 0, 1, 1], [], []>} : vector<128x32xbf16>, vector<32x64xbf16>, vector<128x64xf32> -> vector<128x64xf32>
    %c0_24 = arith.constant 0 : index
    %c0_25 = arith.constant 0 : index
    %24 = vector.load %arg9[%c0_24, %c0_25] : memref<1x64xf32, #tpu.memory_space<vmem>>, vector<1x64xf32>
    %25 = vector.broadcast %24 : vector<1x64xf32> to vector<128x64xf32>
    %26 = arith.addf %23, %25 : vector<128x64xf32>
    %c0_26 = arith.constant 0 : index
    %c0_27 = arith.constant 0 : index
    %27 = vector.load %arg17[%c0_26, %c0_27] : memref<128x64xf32, #tpu.memory_space<vmem>>, vector<128x64xf32>
    tpu.vector_store %arg17[%c0_26, %c0_27], %26 {strides = array<i32>} : memref<128x64xf32, #tpu.memory_space<vmem>>, vector<128x64xf32>,
    %c0_28 = arith.constant 0 : index
    %c0_29 = arith.constant 0 : index
    %28 = vector.load %arg10[%c0_28, %c0_29] : memref<32x8xf32, #tpu.memory_space<vmem>>, vector<32x8xf32>
    %c0_30 = arith.constant 0 : index
    %c0_31 = arith.constant 0 : index
    %29 = vector.load %arg11[%c0_30, %c0_31] : memref<8x32xf32, #tpu.memory_space<vmem>>, vector<8x32xf32>
    %cst_32 = arith.constant -1.000000e+30 : f32
    %30 = vector.broadcast %cst_32 : f32 to vector<16x8xf32>
    %cst_33 = arith.constant 0.000000e+00 : f32
    %31 = vector.broadcast %cst_33 : f32 to vector<16x8xf32>
    %cst_34 = arith.constant 0.000000e+00 : f32
    %32 = vector.broadcast %cst_34 : f32 to vector<16x32xf32>
    %c0_i32_35 = arith.constant 0 : i32
    %c8_i32_36 = arith.constant 8 : i32
    %33 = arith.addi %c0_i32_35, %c8_i32_36 : i32
    %c1_i32_37 = arith.constant 1 : i32
    %34:3 = scf.for %arg18 = %c0_i32_35 to %33 step %c1_i32_37 iter_args(%arg19 = %30, %arg20 = %31, %arg21 = %32) -> (vector<16x8xf32>, vector<16x8xf32>, vector<16x32xf32>)  : i32 {
      %c16_i32 = arith.constant 16 : i32
      %45 = arith.muli %arg18, %c16_i32 : i32
      %46 = tpu.assume_multiple %45, 16 : i32
      %47 = arith.index_cast %46 : i32 to index
      %c0_47 = arith.constant 0 : index
      %48 = vector.load %arg17[%47, %c0_47] : memref<128x64xf32, #tpu.memory_space<vmem>>, vector<16x32xf32>
      %49 = arith.index_cast %46 : i32 to index
      %c32 = arith.constant 32 : index
      %50 = vector.load %arg17[%49, %c32] : memref<128x64xf32, #tpu.memory_space<vmem>>, vector<16x32xf32>
      %51 = arith.mulf %48, %19 : vector<16x32xf32>
      %cst_48 = arith.constant dense<0.000000e+00> : vector<16x8xf32>
      %52 = tpu.matmul %51, %28, %cst_48 {dimension_numbers = #tpu.dot_dimension_numbers<[1], [0], [0], [1], [0, 0, 1, 1], [], []>} : vector<16x32xf32>, vector<32x8xf32>, vector<16x8xf32> -> vector<16x8xf32>
      %53 = arith.maximumf %arg19, %52 : vector<16x8xf32>
      %54 = arith.subf %arg19, %53 : vector<16x8xf32>
      %55 = math.exp %54 : vector<16x8xf32>
      %56 = arith.subf %52, %53 : vector<16x8xf32>
      %57 = math.exp %56 : vector<16x8xf32>
      %58 = arith.mulf %55, %arg20 : vector<16x8xf32>
      %59 = arith.addf %58, %57 : vector<16x8xf32>
      %cst_49 = arith.constant dense<0.000000e+00> : vector<16x32xf32>
      %60 = tpu.matmul %55, %29, %cst_49 {dimension_numbers = #tpu.dot_dimension_numbers<[1], [0], [0], [1], [0, 0, 1, 1], [], []>} : vector<16x8xf32>, vector<8x32xf32>, vector<16x32xf32> -> vector<16x32xf32>
      %61 = arith.mulf %60, %arg21 : vector<16x32xf32>
      %cst_50 = arith.constant dense<0.000000e+00> : vector<16x32xf32>
      %62 = tpu.matmul %57, %29, %cst_50 {dimension_numbers = #tpu.dot_dimension_numbers<[1], [0], [0], [1], [0, 0, 1, 1], [], []>} : vector<16x8xf32>, vector<8x32xf32>, vector<16x32xf32> -> vector<16x32xf32>
      %63 = arith.mulf %62, %50 : vector<16x32xf32>
      %64 = arith.addf %61, %63 : vector<16x32xf32>
      scf.yield %53, %59, %64 : vector<16x8xf32>, vector<16x8xf32>, vector<16x32xf32>
    }
    %c8_i32_38 = arith.constant 8 : i32
    %cst_39 = arith.constant dense<0.000000e+00> : vector<16x32xf32>
    %35 = tpu.matmul %34#1, %29, %cst_39 {dimension_numbers = #tpu.dot_dimension_numbers<[1], [0], [0], [1], [0, 0, 1, 1], [], []>} : vector<16x8xf32>, vector<8x32xf32>, vector<16x32xf32> -> vector<16x32xf32>
    %36 = tpu.reciprocal %35 {approx = true} : vector<16x32xf32> -> vector<16x32xf32>
    %37 = arith.mulf %34#2, %36 : vector<16x32xf32>
    %38 = arith.truncf %37 : vector<16x32xf32> to vector<16x32xbf16>
    %c0_40 = arith.constant 0 : index
    %c0_41 = arith.constant 0 : index
    %39 = vector.load %arg12[%c0_40, %c0_41] : memref<32x128xbf16, #tpu.memory_space<vmem>>, vector<32x128xbf16>
    %cst_42 = arith.constant dense<0.000000e+00> : vector<16x128xf32>
    %40 = tpu.matmul %38, %39, %cst_42 {dimension_numbers = #tpu.dot_dimension_numbers<[1], [0], [0], [1], [0, 0, 1, 1], [], []>} : vector<16x32xbf16>, vector<32x128xbf16>, vector<16x128xf32> -> vector<16x128xf32>
    %c0_43 = arith.constant 0 : index
    %c0_44 = arith.constant 0 : index
    %41 = vector.load %arg13[%c0_43, %c0_44] : memref<1x128xf32, #tpu.memory_space<vmem>>, vector<1x128xf32>
    %42 = vector.broadcast %41 : vector<1x128xf32> to vector<16x128xf32>
    %43 = arith.addf %40, %42 : vector<16x128xf32>
    %c0_45 = arith.constant 0 : index
    %c0_46 = arith.constant 0 : index
    %44 = vector.load %arg14[%c0_45, %c0_46] : memref<16x128xf32, #tpu.memory_space<vmem>>, vector<16x128xf32>
    tpu.vector_store %arg14[%c0_45, %c0_46], %43 {strides = array<i32>} : memref<16x128xf32, #tpu.memory_space<vmem>>, vector<16x128xf32>,
    return
  }
  func.func @transform_0(%arg0: i32) -> (i32, i32, i32) {
    %c0_i32 = arith.constant 0 : i32
    %c0_i32_0 = arith.constant 0 : i32
    %c0_i32_1 = arith.constant 0 : i32
    return %c0_i32, %arg0, %c0_i32_0 : i32, i32, i32
  }
  func.func @transform_1(%arg0: i32) -> (i32, i32) {
    %c0_i32 = arith.constant 0 : i32
    %c0_i32_0 = arith.constant 0 : i32
    %c0_i32_1 = arith.constant 0 : i32
    return %c0_i32, %c0_i32_0 : i32, i32
  }
  func.func @transform_2(%arg0: i32) -> (i32, i32) {
    %c0_i32 = arith.constant 0 : i32
    %c0_i32_0 = arith.constant 0 : i32
    %c0_i32_1 = arith.constant 0 : i32
    return %c0_i32, %c0_i32_0 : i32, i32
  }
  func.func @transform_3(%arg0: i32) -> (i32, i32) {
    %c0_i32 = arith.constant 0 : i32
    %c0_i32_0 = arith.constant 0 : i32
    %c0_i32_1 = arith.constant 0 : i32
    return %c0_i32, %c0_i32_0 : i32, i32
  }
  func.func @transform_4(%arg0: i32) -> (i32, i32) {
    %c0_i32 = arith.constant 0 : i32
    %c0_i32_0 = arith.constant 0 : i32
    %c0_i32_1 = arith.constant 0 : i32
    return %c0_i32, %c0_i32_0 : i32, i32
  }
  func.func @transform_5(%arg0: i32) -> (i32, i32) {
    %c0_i32 = arith.constant 0 : i32
    %c0_i32_0 = arith.constant 0 : i32
    %c0_i32_1 = arith.constant 0 : i32
    return %c0_i32, %c0_i32_0 : i32, i32
  }
  func.func @transform_6(%arg0: i32) -> (i32, i32) {
    %c0_i32 = arith.constant 0 : i32
    %c0_i32_0 = arith.constant 0 : i32
    %c0_i32_1 = arith.constant 0 : i32
    return %c0_i32, %c0_i32_0 : i32, i32
  }
  func.func @transform_7(%arg0: i32) -> (i32, i32) {
    %c0_i32 = arith.constant 0 : i32
    %c0_i32_0 = arith.constant 0 : i32
    %c0_i32_1 = arith.constant 0 : i32
    return %c0_i32, %c0_i32_0 : i32, i32
  }
  func.func @transform_8(%arg0: i32) -> (i32, i32) {
    %c0_i32 = arith.constant 0 : i32
    %c0_i32_0 = arith.constant 0 : i32
    %c0_i32_1 = arith.constant 0 : i32
    return %c0_i32, %c0_i32_0 : i32, i32
  }
  func.func @transform_9(%arg0: i32) -> (i32, i32) {
    %c0_i32 = arith.constant 0 : i32
    %c0_i32_0 = arith.constant 0 : i32
    %c0_i32_1 = arith.constant 0 : i32
    return %c0_i32, %c0_i32_0 : i32, i32
  }
  func.func @transform_10(%arg0: i32) -> (i32, i32) {
    %c0_i32 = arith.constant 0 : i32
    %c0_i32_0 = arith.constant 0 : i32
    %c0_i32_1 = arith.constant 0 : i32
    return %c0_i32, %c0_i32_0 : i32, i32
  }
  func.func @transform_11(%arg0: i32) -> (i32, i32) {
    %c0_i32 = arith.constant 0 : i32
    %c0_i32_0 = arith.constant 0 : i32
    %c0_i32_1 = arith.constant 0 : i32
    return %c0_i32, %c0_i32_0 : i32, i32
  }
  func.func @transform_12(%arg0: i32) -> (i32, i32) {
    %c0_i32 = arith.constant 0 : i32
    %c0_i32_0 = arith.constant 0 : i32
    %c0_i32_1 = arith.constant 0 : i32
    return %c0_i32, %c0_i32_0 : i32, i32
  }
  func.func @transform_13(%arg0: i32) -> (i32, i32) {
    %c0_i32 = arith.constant 0 : i32
    %c0_i32_0 = arith.constant 0 : i32
    return %arg0, %c0_i32 : i32, i32
  }
}

</mosaic_0001>

<bundles_post_ra>
// kernel: tpu_custom_call.1
= control target key start
LH: loop header
LB: loop body
LE: loop exit
PB: predicated region body
PF: predicated region fallthrough
CT: control target
= control target key end

     0   :  { %18 = vsyncpa [#allocation6], 0  ;;  %s2912_s0 = inlined_call_operand.hbm [shape: bf16[8,16,16], index: 0, kind: input, shape index: {}]   ;;  %s2913_s1 = inlined_call_operand.hbm [shape: bf16[16,128], index: 1, kind: input, shape index: {}]   ;;  %s2914_s2 = inlined_call_operand.hbm [shape: f32[1,128], index: 2, kind: input, shape index: {}]   ;;  %s2915_s3 = inlined_call_operand.hbm [shape: bf16[16,64], index: 3, kind: input, shape index: {}]   ;;  %s2916_s4 = inlined_call_operand.hbm [shape: bf16[16,64], index: 4, kind: input, shape index: {}]   ;;  %s2917_s5 = inlined_call_operand.hbm [shape: bf16[32,32], index: 5, kind: input, shape index: {}]   ;;  %s2918_s6 = inlined_call_operand.hbm [shape: f32[1,32], index: 6, kind: input, shape index: {}]   ;;  %s2919_s7 = inlined_call_operand.hbm [shape: bf16[32,64], index: 7, kind: input, shape index: {}]   ;;  %s2920_s8 = inlined_call_operand.hbm [shape: f32[1,64], index: 8, kind: input, shape index: {}]   ;;  %s2921_s9 = inlined_call_operand.hbm [shape: f32[32,8], index: 9, kind: input, shape index: {}]   ;;  %s2922_s10 = inlined_call_operand.hbm [shape: f32[8,32], index: 10, kind: input, shape index: {}]   ;;  %s2923_s11 = inlined_call_operand.hbm [shape: bf16[32,128], index: 11, kind: input, shape index: {}]   ;;  %s2924_s12 = inlined_call_operand.hbm [shape: f32[1,128], index: 12, kind: input, shape index: {}]   ;;  %s2925_s13 = inlined_call_operand.hbm [shape: f32[16,128], index: 13, kind: output, shape index: {}]  }
   0x1   :  { %19 = vsyncpa [#allocation9], 0 }
   0x2   :  { %20 = vsyncpa [#allocation12], 0 }
   0x3   :  { %21 = vsyncpa [#allocation15], 0 }
   0x4   :  { %22 = vsyncpa [#allocation18], 0 }
   0x5   :  { %23 = vsyncpa [#allocation21], 0 }
   0x6   :  { %24 = vsyncpa [#allocation24], 0 }
   0x7   :  { %25 = vsyncpa [#allocation7], 0  ;;  %s2370_s25 = smov [#allocation8]   ;;  %s2371_s27 = smov [#allocation11]  }
   0x8   :  { %s43_s26 = sshll.u32 %s2370_s25, 4  ;;  %s65_s28 = sshll.u32 %s2371_s27, 4  ;;  %s44_s26 = int_to_ptr.vmem [resolvable:$true] %s43_s26  ;;  %s2469_s28 = int_to_ptr.vmem [resolvable:$true] %s65_s28 }
   0x9   :  { %s1918_s14 = scalar_lea.hbm %s2913_s1, 128 }
   0xa   :  { %p1919_p0 = scmp.ne.s32.totalorder %s2913_s1, %s1918_s14  ;;  %p1922_p1 = scmp.lt.u32.totalorder %s1918_s14, %s2913_s1 }
   0xc   :  { %p1924_p2 = pnand %p1922_p1, %p1919_p0 }
   0xe   :  { %1927 = shalt.err (!%p1924_p2)
}
   0xf   :  { %s1928_s19 = scalar_lea.vmem %s44_s26, 128  ;;  %p1933_p4 = scmp.lt.s32.totalorder %s44_s26, %s44_s26 }
  0x10   :  { %p1929_p3 = scmp.ne.s32.totalorder %s44_s26, %s1928_s19  ;;  %p1934_p5 = scmp.lt.s32.totalorder %s1928_s19, %s1928_s19 }
  0x12   :  { %p1935_p6 = por %p1934_p5, %p1933_p4 }
  0x14   :  { %p1936_p7 = pnand %p1935_p6, %p1929_p3 }
  0x16   :  { %1939 = shalt.err (!%p1936_p7)
}
  0x17   :  { %s2372_s20 = smov 64   ;;  %s2373_s21 = smov 4  }
  0x18   :  { %49 = dma.hbm_to_vmem [thread:$0]  %s2913_s1, 128, %s44_s26, [#allocation9], %s2372_s20, %s2372_s20, %s2373_s21  }
  0x19   :  { %s1940_s27 = scalar_lea.hbm %s2915_s3, 128 }
  0x1a   :  { %p1941_p8 = scmp.ne.s32.totalorder %s2915_s3, %s1940_s27  ;;  %p1944_p9 = scmp.lt.u32.totalorder %s1940_s27, %s2915_s3 }
  0x1c   :  { %p1946_p10 = pnand %p1944_p9, %p1941_p8 }
  0x1e   :  { %1949 = shalt.err (!%p1946_p10)
}
  0x1f   :  { %s1950_s16 = scalar_lea.vmem %s2469_s28, 128  ;;  %p1955_p12 = scmp.lt.s32.totalorder %s2469_s28, %s2469_s28 }
  0x20   :  { %p1951_p11 = scmp.ne.s32.totalorder %s2469_s28, %s1950_s16  ;;  %p1956_p13 = scmp.lt.s32.totalorder %s1950_s16, %s1950_s16 }
  0x22   :  { %p1957_p0 = por %p1956_p13, %p1955_p12 }
  0x24   :  { %p1958_p1 = pnand %p1957_p0, %p1951_p11 }
  0x26   :  { %1961 = shalt.err (!%p1958_p1)
}
  0x27   :  { %71 = dma.hbm_to_vmem [thread:$0]  %s2915_s3, 128, %s2469_s28, [#allocation12], %s2372_s20, %s2372_s20, %s2373_s21  }
  0x28   :  { %s2374_s17 = smov [#allocation14]   ;;  %s2375_s19 = smov [#allocation17]  }
  0x29   :  { %s89_s18 = sshll.u32 %s2374_s17, 4  ;;  %s111_s22 = sshll.u32 %s2375_s19, 4  ;;  %s90_s18 = int_to_ptr.vmem [resolvable:$true] %s89_s18  ;;  %s2506_s22 = int_to_ptr.vmem [resolvable:$true] %s111_s22 }
  0x2a   :  { %s1962_s25 = scalar_lea.hbm %s2917_s5, 256 }
  0x2b   :  { %p1963_p2 = scmp.ne.s32.totalorder %s2917_s5, %s1962_s25  ;;  %p1966_p3 = scmp.lt.u32.totalorder %s1962_s25, %s2917_s5 }
  0x2d   :  { %p1968_p4 = pnand %p1966_p3, %p1963_p2 }
  0x2f   :  { %1971 = shalt.err (!%p1968_p4)
}
  0x30   :  { %s1972_s3 = scalar_lea.vmem %s90_s18, 256  ;;  %p1977_p6 = scmp.lt.s32.totalorder %s90_s18, %s90_s18 }
  0x31   :  { %p1973_p5 = scmp.ne.s32.totalorder %s90_s18, %s1972_s3  ;;  %p1978_p7 = scmp.lt.s32.totalorder %s1972_s3, %s1972_s3 }
  0x33   :  { %p1979_p8 = por %p1978_p7, %p1977_p6 }
  0x35   :  { %p1980_p9 = pnand %p1979_p8, %p1973_p5 }
  0x37   :  { %1983 = shalt.err (!%p1980_p9)
}
  0x38   :  { %95 = dma.hbm_to_vmem [thread:$0]  %s2917_s5, 256, %s90_s18, [#allocation15], %s2372_s20, %s2372_s20, %s2373_s21  }
  0x39   :  { %s1984_s26 = scalar_lea.hbm %s2919_s7, 256 }
  0x3a   :  { %p1985_p10 = scmp.ne.s32.totalorder %s2919_s7, %s1984_s26  ;;  %p1988_p11 = scmp.lt.u32.totalorder %s1984_s26, %s2919_s7 }
  0x3c   :  { %p1990_p12 = pnand %p1988_p11, %p1985_p10 }
  0x3e   :  { %1993 = shalt.err (!%p1990_p12)
}
  0x3f   :  { %s1994_s25 = scalar_lea.vmem %s2506_s22, 256  ;;  %p1999_p0 = scmp.lt.s32.totalorder %s2506_s22, %s2506_s22 }
  0x40   :  { %p1995_p13 = scmp.ne.s32.totalorder %s2506_s22, %s1994_s25  ;;  %p2000_p1 = scmp.lt.s32.totalorder %s1994_s25, %s1994_s25 }
  0x42   :  { %p2001_p2 = por %p2000_p1, %p1999_p0 }
  0x44   :  { %p2002_p3 = pnand %p2001_p2, %p1995_p13 }
  0x46   :  { %2005 = shalt.err (!%p2002_p3)
}
  0x47   :  { %117 = dma.hbm_to_vmem [thread:$0]  %s2919_s7, 256, %s2506_s22, [#allocation18], %s2372_s20, %s2372_s20, %s2373_s21  }
  0x48   :  { %s2376_s27 = smov [#allocation20]   ;;  %s2006_s3 = scalar_lea.hbm %s2921_s9, 512 }
  0x49   :  { %s133_s29 = sshll.u32 %s2376_s27, 4  ;;  %p2007_p4 = scmp.ne.s32.totalorder %s2921_s9, %s2006_s3  ;;  %s134_s29 = int_to_ptr.vmem [resolvable:$true] %s133_s29 }
  0x4a   :  { %p2010_p5 = scmp.lt.u32.totalorder %s2006_s3, %s2921_s9 }
  0x4c   :  { %p2012_p6 = pnand %p2010_p5, %p2007_p4 }
  0x4e   :  { %2015 = shalt.err (!%p2012_p6)
}
  0x4f   :  { %s2016_s26 = scalar_lea.vmem %s134_s29, 512  ;;  %p2021_p8 = scmp.lt.s32.totalorder %s134_s29, %s134_s29 }
  0x50   :  { %p2017_p7 = scmp.ne.s32.totalorder %s134_s29, %s2016_s26  ;;  %p2022_p9 = scmp.lt.s32.totalorder %s2016_s26, %s2016_s26 }
  0x52   :  { %p2023_p10 = por %p2022_p9, %p2021_p8 }
  0x54   :  { %p2024_p11 = pnand %p2023_p10, %p2017_p7 }
  0x56   :  { %2027 = shalt.err (!%p2024_p11)
}
  0x57   :  { %s2377_s7 = smov 128   ;;  %s2378_s22 = smov 8  }
  0x58   :  { %139 = dma.hbm_to_vmem [thread:$0]  %s2921_s9, 512, %s134_s29, [#allocation21], %s2377_s7, %s2377_s7, %s2378_s22  }
  0x59   :  { %s2379_s23 = smov [#allocation23]   ;;  %s2380_s25 = smov [#allocation5]  }
  0x5a   :  { %s155_s24 = sshll.u32 %s2379_s23, 4  ;;  %s31_s5 = sshll.u32 %s2380_s25, 4  ;;  %s156_s24 = int_to_ptr.vmem [resolvable:$true] %s155_s24  ;;  %s32_s5 = int_to_ptr.vmem [resolvable:$true] %s31_s5 }
  0x5b   :  { %s2028_s30 = scalar_lea.hbm %s2923_s11, 256 }
  0x5c   :  { %p2029_p12 = scmp.ne.s32.totalorder %s2923_s11, %s2028_s30  ;;  %p2032_p13 = scmp.lt.u32.totalorder %s2028_s30, %s2923_s11 }
  0x5e   :  { %p2034_p0 = pnand %p2032_p13, %p2029_p12 }
  0x60   :  { %2037 = shalt.err (!%p2034_p0)
}
  0x61   :  { %s2038_s9 = scalar_lea.vmem %s156_s24, 256  ;;  %p2043_p2 = scmp.lt.s32.totalorder %s156_s24, %s156_s24 }
  0x62   :  { %p2039_p1 = scmp.ne.s32.totalorder %s156_s24, %s2038_s9  ;;  %p2044_p3 = scmp.lt.s32.totalorder %s2038_s9, %s2038_s9 }
  0x64   :  { %p2045_p4 = por %p2044_p3, %p2043_p2 }
  0x66   :  { %p2046_p5 = pnand %p2045_p4, %p2039_p1 }
  0x68   :  { %2049 = shalt.err (!%p2046_p5)
}
  0x69   :  { %161 = dma.hbm_to_vmem [thread:$0]  %s2923_s11, 256, %s156_s24, [#allocation24], %s2372_s20, %s2372_s20, %s2373_s21  }
  0x6a   :  { %s2050_s17 = scalar_lea.hbm %s2912_s0, 1024 }
  0x6b   :  { %p2051_p6 = scmp.ne.s32.totalorder %s2912_s0, %s2050_s17  ;;  %p2054_p7 = scmp.lt.u32.totalorder %s2050_s17, %s2912_s0 }
  0x6d   :  { %p2056_p8 = pnand %p2054_p7, %p2051_p6 }
  0x6f   :  { %2059 = shalt.err (!%p2056_p8)
}
  0x70   :  { %s2060_s27 = scalar_lea.vmem %s32_s5, 1024  ;;  %p2065_p10 = scmp.lt.s32.totalorder %s32_s5, %s32_s5 }
  0x71   :  { %p2061_p9 = scmp.ne.s32.totalorder %s32_s5, %s2060_s27  ;;  %p2066_p11 = scmp.lt.s32.totalorder %s2060_s27, %s2060_s27 }
  0x73   :  { %p2067_p12 = por %p2066_p11, %p2065_p10 }
  0x75   :  { %p2068_p13 = pnand %p2067_p12, %p2061_p9 }
  0x77   :  { %2071 = shalt.err (!%p2068_p13)
}
  0x78   :  { %37 = dma.hbm_to_vmem [thread:$0]  %s2912_s0, 1024, %s32_s5, [#allocation6], %s2372_s20, %s2372_s20, %s2373_s21  }
  0x79   :  { %s2381_s30 = smov [#allocation10]   ;;  %s2382_s3 = smov [#allocation13]  }
  0x7a   :  { %s56_s14 = sshll.u32 %s2381_s30, 4  ;;  %s77_s28 = sshll.u32 %s2382_s3, 4  ;;  %s57_s14 = int_to_ptr.vmem [resolvable:$true] %s56_s14  ;;  %s78_s28 = int_to_ptr.vmem [resolvable:$true] %s77_s28 }
  0x7b   :  { %s2072_s29 = scalar_lea.hbm %s2914_s2, 16 }
  0x7c   :  { %p2073_p0 = scmp.ne.s32.totalorder %s2914_s2, %s2072_s29  ;;  %p2076_p1 = scmp.lt.u32.totalorder %s2072_s29, %s2914_s2 }
  0x7e   :  { %p2078_p2 = pnand %p2076_p1, %p2073_p0 }
  0x80   :  { %2081 = shalt.err (!%p2078_p2)
}
  0x81   :  { %s2082_s0 = scalar_lea.vmem %s57_s14, 16  ;;  %s2086_s5 = scalar_lea.vmem %s57_s14, 32 }
  0x82   :  { %p2083_p3 = scmp.ne.s32.totalorder %s57_s14, %s2082_s0  ;;  %p2087_p4 = scmp.lt.s32.totalorder %s57_s14, %s57_s14 }
  0x83   :  { %p2088_p5 = scmp.lt.s32.totalorder %s2086_s5, %s2082_s0 }
  0x85   :  { %p2089_p6 = por %p2088_p5, %p2087_p4 }
  0x87   :  { %p2090_p7 = pnand %p2089_p6, %p2083_p3 }
  0x89   :  { %2093 = shalt.err (!%p2090_p7)
}
  0x8a   :  { %59 = dma.hbm_to_vmem [thread:$0]  %s2914_s2, 16, %s57_s14, [#allocation9]  }
  0x8b   :  { %s2094_s27 = scalar_lea.hbm %s2916_s4, 128 }
  0x8c   :  { %p2095_p8 = scmp.ne.s32.totalorder %s2916_s4, %s2094_s27  ;;  %p2098_p9 = scmp.lt.u32.totalorder %s2094_s27, %s2916_s4 }
  0x8e   :  { %p2100_p10 = pnand %p2098_p9, %p2095_p8 }
  0x90   :  { %2103 = shalt.err (!%p2100_p10)
}
  0x91   :  { %s2104_s15 = scalar_lea.vmem %s78_s28, 128  ;;  %p2109_p12 = scmp.lt.s32.totalorder %s78_s28, %s78_s28 }
  0x92   :  { %p2105_p11 = scmp.ne.s32.totalorder %s78_s28, %s2104_s15  ;;  %p2110_p13 = scmp.lt.s32.totalorder %s2104_s15, %s2104_s15 }
  0x94   :  { %p2111_p0 = por %p2110_p13, %p2109_p12 }
  0x96   :  { %p2112_p1 = pnand %p2111_p0, %p2105_p11 }
  0x98   :  { %2115 = shalt.err (!%p2112_p1)
}
  0x99   :  { %83 = dma.hbm_to_vmem [thread:$0]  %s2916_s4, 128, %s78_s28, [#allocation12], %s2372_s20, %s2372_s20, %s2373_s21  }
  0x9a   :  { %s2383_s9 = smov [#allocation16]   ;;  %s2384_s16 = smov [#allocation19]  }
  0x9b   :  { %s102_s29 = sshll.u32 %s2383_s9, 4  ;;  %s124_s1 = sshll.u32 %s2384_s16, 4  ;;  %s103_s29 = int_to_ptr.vmem [resolvable:$true] %s102_s29  ;;  %s125_s1 = int_to_ptr.vmem [resolvable:$true] %s124_s1 }
  0x9c   :  { %s2116_s0 = scalar_lea.hbm %s2918_s6, 16 }
  0x9d   :  { %p2117_p2 = scmp.ne.s32.totalorder %s2918_s6, %s2116_s0  ;;  %p2120_p3 = scmp.lt.u32.totalorder %s2116_s0, %s2918_s6 }
  0x9f   :  { %p2122_p4 = pnand %p2120_p3, %p2117_p2 }
  0xa1   :  { %2125 = shalt.err (!%p2122_p4)
}
  0xa2   :  { %s2126_s4 = scalar_lea.vmem %s103_s29, 16  ;;  %s2130_s20 = scalar_lea.vmem %s103_s29, 32 }
  0xa3   :  { %p2127_p5 = scmp.ne.s32.totalorder %s103_s29, %s2126_s4  ;;  %p2131_p6 = scmp.lt.s32.totalorder %s103_s29, %s103_s29 }
  0xa4   :  { %p2132_p7 = scmp.lt.s32.totalorder %s2130_s20, %s2126_s4 }
  0xa6   :  { %p2133_p8 = por %p2132_p7, %p2131_p6 }
  0xa8   :  { %p2134_p9 = pnand %p2133_p8, %p2127_p5 }
  0xaa   :  { %2137 = shalt.err (!%p2134_p9)
}
  0xab   :  { %105 = dma.hbm_to_vmem [thread:$0]  %s2918_s6, 16, %s103_s29, [#allocation15]  }
  0xac   :  { %s2138_s11 = scalar_lea.hbm %s2920_s8, 16 }
  0xad   :  { %p2139_p10 = scmp.ne.s32.totalorder %s2920_s8, %s2138_s11  ;;  %p2142_p11 = scmp.lt.u32.totalorder %s2138_s11, %s2920_s8 }
  0xaf   :  { %p2144_p12 = pnand %p2142_p11, %p2139_p10 }
  0xb1   :  { %2147 = shalt.err (!%p2144_p12)
}
  0xb2   :  { %s2148_s2 = scalar_lea.vmem %s125_s1, 16  ;;  %s2152_s14 = scalar_lea.vmem %s125_s1, 32 }
  0xb3   :  { %p2149_p13 = scmp.ne.s32.totalorder %s125_s1, %s2148_s2  ;;  %p2153_p0 = scmp.lt.s32.totalorder %s125_s1, %s125_s1 }
  0xb4   :  { %p2154_p1 = scmp.lt.s32.totalorder %s2152_s14, %s2148_s2 }
  0xb6   :  { %p2155_p2 = por %p2154_p1, %p2153_p0 }
  0xb8   :  { %p2156_p3 = pnand %p2155_p2, %p2149_p13 }
  0xba   :  { %2159 = shalt.err (!%p2156_p3)
}
  0xbb   :  { %127 = dma.hbm_to_vmem [thread:$0]  %s2920_s8, 16, %s125_s1, [#allocation18]  }
  0xbc   :  { %s2385_s29 = smov [#allocation22]   ;;  %s2386_s26 = smov [#allocation25]  }
  0xbd   :  { %s146_s16 = sshll.u32 %s2385_s29, 4  ;;  %s168_s17 = sshll.u32 %s2386_s26, 4  ;;  %s147_s16 = int_to_ptr.vmem [resolvable:$true] %s146_s16  ;;  %s169_s17 = int_to_ptr.vmem [resolvable:$true] %s168_s17 }
  0xbe   :  { %s2160_s19 = scalar_lea.hbm %s2922_s10, 128 }
  0xbf   :  { %p2161_p4 = scmp.ne.s32.totalorder %s2922_s10, %s2160_s19  ;;  %p2164_p5 = scmp.lt.u32.totalorder %s2160_s19, %s2922_s10 }
  0xc1   :  { %p2166_p6 = pnand %p2164_p5, %p2161_p4 }
  0xc3   :  { %2169 = shalt.err (!%p2166_p6)
}
  0xc4   :  { %s2170_s8 = scalar_lea.vmem %s147_s16, 128  ;;  %p2175_p8 = scmp.lt.s32.totalorder %s147_s16, %s147_s16 }
  0xc5   :  { %p2171_p7 = scmp.ne.s32.totalorder %s147_s16, %s2170_s8  ;;  %p2176_p9 = scmp.lt.s32.totalorder %s2170_s8, %s2170_s8 }
  0xc7   :  { %p2177_p10 = por %p2176_p9, %p2175_p8 }
  0xc9   :  { %p2178_p11 = pnand %p2177_p10, %p2171_p7 }
  0xcb   :  { %2181 = shalt.err (!%p2178_p11)
}
  0xcc   :  { %149 = dma.hbm_to_vmem [thread:$0]  %s2922_s10, 128, %s147_s16, [#allocation21]  }
  0xcd   :  { %s2182_s27 = scalar_lea.hbm %s2924_s12, 16 }
  0xce   :  { %p2183_p12 = scmp.ne.s32.totalorder %s2924_s12, %s2182_s27  ;;  %p2186_p13 = scmp.lt.u32.totalorder %s2182_s27, %s2924_s12 }
  0xd0   :  { %p2188_p0 = pnand %p2186_p13, %p2183_p12 }
  0xd2   :  { %2191 = shalt.err (!%p2188_p0)
}
  0xd3   :  { %s2192_s15 = scalar_lea.vmem %s169_s17, 16  ;;  %s2196_s2 = scalar_lea.vmem %s169_s17, 32 }
  0xd4   :  { %p2193_p1 = scmp.ne.s32.totalorder %s169_s17, %s2192_s15  ;;  %p2197_p2 = scmp.lt.s32.totalorder %s169_s17, %s169_s17 }
  0xd5   :  { %p2198_p3 = scmp.lt.s32.totalorder %s2196_s2, %s2192_s15 }
  0xd7   :  { %p2199_p4 = por %p2198_p3, %p2197_p2 }
  0xd9   :  { %p2200_p5 = pnand %p2199_p4, %p2193_p1 }
  0xdb   :  { %2203 = shalt.err (!%p2200_p5)
}
  0xdc   :  { %171 = dma.hbm_to_vmem [thread:$0]  %s2924_s12, 16, %s169_s17, [#allocation24]  }
  0xdd   :  { %2290 = dma.done.wait [#allocation6], 1024  }
  0xde   :  { %2291 = vsyncadd [#allocation6], 4294966272 }
  0xdf   :  { %2292 = dma.done.wait [#allocation9], 144  }
  0xe0   :  { %2293 = vsyncadd [#allocation9], 4294967152 }
  0xe1   :  { %2294 = dma.done.wait [#allocation12], 256  }
  0xe2   :  { %2295 = vsyncadd [#allocation12], 4294967040 }
  0xe3   :  { %2296 = dma.done.wait [#allocation15], 272  }
  0xe4   :  { %2297 = vsyncadd [#allocation15], 4294967024 }
  0xe5   :  { %2298 = dma.done.wait [#allocation18], 272  }
  0xe6   :  { %2299 = vsyncadd [#allocation18], 4294967024 }
  0xe7   :  { %2300 = dma.done.wait [#allocation21], 640  }
  0xe8   :  { %2301 = vsyncadd [#allocation21], 4294966656 }
  0xe9   :  { %2302 = dma.done.wait [#allocation24], 272  }
  0xea   :  { %2303 = vsyncadd [#allocation24], 4294967024  ;;  %v2663_v0 = vld [vmem:[#allocation11] sm:$0xf]  ;;  %v2665_v1 = vld [vmem:[#allocation11 + $0x4] sm:$0xf] }
  0xeb   :  { %v2667_v2 = vld [vmem:[#allocation13] sm:$0xf]  ;;  %v2669_v3 = vld [vmem:[#allocation13 + $0x4] sm:$0xf]  ;;  %v1854_v4 = vld [vmem:[#allocation8] sm:$0xff]   ;;  %vm283_vm0 = vcmask 130048  }
  0xec   :  { %v1855_v5 = vld [vmem:[#allocation5] sm:$0xff]   ;;  %1591 = vmatprep.subr.bf16.mxu0 %v1854_v4  ;;  %1691 = vmatprep.subr.bf16.mxu1 %v1854_v4  ;;  %v1857_v7 = vld [vmem:[#allocation5 + $0x8] sm:$0xff]   ;;  %v1859_v9 = vld [vmem:[#allocation5 + $0x10] sm:$0xff]   ;;  %v2679_v46 = vmov 0.0   ;;  %v2681_v47 = vmov 0.0   ;;  %v2683_v48 = vmov 0.0  }
  0xed   :  { %v1856_v6 = vld [vmem:[#allocation5 + $0x20] sm:$0xff]   ;;  %1592 = vmatpush3.bf16.msra.mxu0 %v1854_v4  ;;  %1692 = vmatpush3.bf16.msra.mxu1 %v1854_v4  ;;  %v1858_v8 = vld [vmem:[#allocation5 + $0x28] sm:$0xff]   ;;  %v1860_v10 = vld [vmem:[#allocation5 + $0x30] sm:$0xff]   ;;  %v2685_v49 = vmov 0.0   ;;  %v2687_v50 = vmov 0.0   ;;  %v2689_v51 = vmov 0.0  }
  0xee   :  { %1593 = vmatprep.mubr.msk.bf16.mxu0 %vm283_vm0, %v1855_v5  ;;  %1601 = vmatprep.mubr.msk.bf16.mxu1 %vm283_vm0, %v1856_v6  ;;  %v1861_v11 = vld [vmem:[#allocation5 + $0x18] sm:$0xff]   ;;  %v1491_v13 = vld [vmem:[#allocation10] ss:$0 sm:$0xff]  ;;  %v2691_v52 = vmov 0.0   ;;  %v2693_v53 = vmov 0.0   ;;  %s2695_s12 = smov 0  }
  0xef   :  { %v1862_v12 = vld [vmem:[#allocation5 + $0x38] sm:$0xff]  }
  0xf0   :  { %1594 = vmatmul.mubr.msk.bf16.vlgmr.msra.gmra.mrb[0].mxu0 %vm283_vm0, %v1857_v7  ;;  %1602 = vmatmul.mubr.msk.bf16.vlgmr.msra.gmra.mrb[0].mxu1 %vm283_vm0, %v1858_v8 }
  0xf1   :  { %1597 = vmatprep.mubr.msk.bf16.mxu0 %vm283_vm0, %v1859_v9  ;;  %1605 = vmatprep.mubr.msk.bf16.mxu1 %vm283_vm0, %v1860_v10 }
  0xf8   :  { %1598 = vmatmul.mubr.msk.bf16.gmra.mrb[4].mxu0 %vm283_vm0, %v1861_v11  ;;  %1606 = vmatmul.mubr.msk.bf16.gmra.mrb[4].mxu1 %vm283_vm0, %v1862_v12 }
 0x1c3   :  { %v1595_v14 = vpop.f32.mrb[0].mxu0  ;;  %v1603_v15 = vpop.f32.mrb[0].mxu1 }
 0x1c4   :  { %v351_v16 = vadd.f32 %v1595_v14, %v1491_v13  ;;  %v383_v17 = vadd.f32 %v1603_v15, %v1491_v13  ;;  %v342_v18 = vpop.f32.mrb[1].mxu0  ;;  %v374_v19 = vpop.f32.mrb[1].mxu1 }
 0x1c5   :  { %v343_v20 = vadd.f32 %v1491_v13, %v342_v18  ;;  %v375_v21 = vadd.f32 %v1491_v13, %v374_v19  ;;  %v1596_v22 = vpop.f32.mrb[2].mxu0  ;;  %v1604_v23 = vpop.f32.mrb[2].mxu1 }
 0x1c6   :  { %407 = vst [vmem:[#allocation2 + $0x10] sm:$0xff] %v351_v16  ;;  %415 = vst [vmem:[#allocation2 + $0x50] sm:$0xff] %v383_v17  ;;  %v354_v24 = vadd.f32 %v1596_v22, %v1491_v13  ;;  %v386_v25 = vadd.f32 %v1604_v23, %v1491_v13  ;;  %v345_v26 = vpop.f32.mrb[3].mxu0  ;;  %v377_v27 = vpop.f32.mrb[3].mxu1 }
 0x1c7   :  { %405 = vst [vmem:[#allocation2] sm:$0xff] %v343_v20  ;;  %413 = vst [vmem:[#allocation2 + $0x40] sm:$0xff] %v375_v21  ;;  %v346_v28 = vadd.f32 %v1491_v13, %v345_v26  ;;  %v378_v29 = vadd.f32 %v1491_v13, %v377_v27 }
 0x1c8   :  { %408 = vst [vmem:[#allocation2 + $0x18] sm:$0xff] %v354_v24  ;;  %416 = vst [vmem:[#allocation2 + $0x58] sm:$0xff] %v386_v25 }
 0x1c9   :  { %406 = vst [vmem:[#allocation2 + $0x8] sm:$0xff] %v346_v28  ;;  %414 = vst [vmem:[#allocation2 + $0x48] sm:$0xff] %v378_v29 }
 0x1cb   :  { %v1599_v30 = vpop.f32.mrb[4].mxu0  ;;  %v1607_v31 = vpop.f32.mrb[4].mxu1 }
 0x1cc   :  { %v367_v32 = vadd.f32 %v1599_v30, %v1491_v13  ;;  %v399_v33 = vadd.f32 %v1607_v31, %v1491_v13  ;;  %v358_v34 = vpop.f32.mrb[5].mxu0  ;;  %v390_v35 = vpop.f32.mrb[5].mxu1 }
 0x1cd   :  { %v359_v36 = vadd.f32 %v1491_v13, %v358_v34  ;;  %v391_v37 = vadd.f32 %v1491_v13, %v390_v35  ;;  %v1600_v38 = vpop.f32.mrb[6].mxu0  ;;  %v1608_v39 = vpop.f32.mrb[6].mxu1 }
 0x1ce   :  { %411 = vst [vmem:[#allocation2 + $0x30] sm:$0xff] %v367_v32  ;;  %419 = vst [vmem:[#allocation2 + $0x70] sm:$0xff] %v399_v33  ;;  %v370_v40 = vadd.f32 %v1600_v38, %v1491_v13  ;;  %v402_v41 = vadd.f32 %v1608_v39, %v1491_v13  ;;  %v361_v42 = vpop.f32.mrb[7].mxu0  ;;  %v393_v43 = vpop.f32.mrb[7].mxu1 }
 0x1cf   :  { %409 = vst [vmem:[#allocation2 + $0x20] sm:$0xff] %v359_v36  ;;  %417 = vst [vmem:[#allocation2 + $0x60] sm:$0xff] %v391_v37  ;;  %v362_v44 = vadd.f32 %v1491_v13, %v361_v42  ;;  %v394_v45 = vadd.f32 %v1491_v13, %v393_v43 }
 0x1d0   :  { %412 = vst [vmem:[#allocation2 + $0x38] sm:$0xff] %v370_v40  ;;  %420 = vst [vmem:[#allocation2 + $0x78] sm:$0xff] %v402_v41 }
 0x1d1   :  { %410 = vst [vmem:[#allocation2 + $0x28] sm:$0xff] %v362_v44  ;;  %418 = vst [vmem:[#allocation2 + $0x68] sm:$0xff] %v394_v45 }
 0x1d2 LB: > { %v504_v54 = vpack.c.bf16 %v2316_v48, %v2320_v49  ;;  %v1513_v55 = vcombine.low %v2667_v2, %v2669_v3  ;;  %v2387_v56 = vmov 0.0   ;;  %v1511_v57 = vcombine.low %v2663_v0, %v2665_v1  ;;  %s2388_s6 = smov 16   ;;  %s2390_s9 = smov 80   ;;  %s2340_s12 = sphi %s2695_s12, %s430_s12   ;;  %v2336_v53 = vphi %v2693_v53, %v614_v53   ;;  %v2332_v52 = vphi %v2691_v52, %v615_v52   ;;  %v2328_v51 = vphi %v2689_v51, %v2931_v51   ;;  %v2324_v50 = vphi %v2687_v50, %v2930_v50   ;;  %v2320_v49 = vphi %v2685_v49, %v662_v49   ;;  %v2316_v48 = vphi %v2683_v48, %v663_v48   ;;  %v2312_v47 = vphi %v2681_v47, %v2929_v47   ;;  %v2308_v46 = vphi %v2679_v46, %v2928_v46  }
 0x1d3   : > { %1615 = vmatprep.subr.bf16.mxu1 %v2387_v56  ;;  %1609 = vmatprep.subr.bf16.mxu0 %v2387_v56  ;;  %v445_v58 = vpack.c.bf16 %v2332_v52, %v2336_v53  ;;  %vm2389_vm1 = vmmov 0   ;;  %s1509_s29 = sshll.u32 %s2340_s12, 4  ;;  %s2391_s16 = smov 64   ;;  %vm684_vm2 = vcmask 261248  }
 0x1d4   : > { %506 = vrot.lane.b32.xlu0 %v504_v54, %s2388_s6  ;;  %1616 = vmatpush3.bf16.msra.mxu1 %v1513_v55  ;;  %s442_s26 = scalar_lea.vmem [#allocation2], %s1509_s29  ;;  %s2392_s17 = smov 96  }
 0x1d5   : > { %1617 = vmatprep.mubr.msk.bf16.mxu1 %vm2389_vm1, %v2387_v56  ;;  %1610 = vmatpush3.bf16.msra.mxu0 %v1511_v57  ;;  %s440_s0 = ssub.s32 7, %s2340_s12  ;;  %s2393_s23 = smov 32  }
 0x1d6   : > { %1611 = vmatprep.mubr.msk.bf16.mxu0 %vm2389_vm1, %v2387_v56  ;;  %s2730_s5 = sshll.u32 %s440_s0, 4  ;;  %s672_s25 = scalar_lea.vmem [#allocation3], %s1509_s29 }
 0x1d7   : > { %s501_s19 = scalar_lea.vmem [#allocation2], %s2730_s5  ;;  %s683_s4 = scalar_lea.vmem [#allocation3], %s2730_s5 }
 0x1d8   : > { %447 = vrot.lane.b32.xlu0 %v445_v58, %s2390_s9  ;;  %v443_v4 = vld [vmem:[%s442_s26] sm:$0xff]  ;;  %v444_v7 = vld [vmem:[%s442_s26 + $0x8] sm:$0xff]  ;;  %s430_s12 = sadd.s32 1, %s2340_s12  }
 0x1d9   : > { %v502_v18 = vld [vmem:[%s501_s19] sm:$0xff]  ;;  %v503_v23 = vld [vmem:[%s501_s19 + $0x8] sm:$0xff]  ;;  %p427_p6 = scmp.ge.s32.totalorder %s430_s12, 8  }
 0x1da   :  { %s2394_s20 = smov (%p427_p6), 48   ;;  %vm721_vm3 = vcmask (%p427_p6), 261120   ;;  %vm2396_vm4 = vmmov (%p427_p6), 0   ;;  %v1903_v3 = vld [vmem:[#allocation14 + $0x8] sm:$0xff] (%p427_p6)   ;;  %vm934_vm5 = vcmask (%p427_p6), 523264   ;;  %s2842_s8 = smov (%p427_p6), 0  }
 0x246   : > { %v507_v59 = vpop.permute.xlu0 %506 }
 0x247   : > { %1618 = vmatmul.mubr.msk.bf16.vlgmr.msra.gmra.mrb[0].mxu1 %vm283_vm0, %v507_v59 }
 0x24a   : > { %v448_v60 = vpop.permute.xlu0 %447 }
 0x24b   : > { %1612 = vmatmul.mubr.msk.bf16.vlgmr.msra.gmra.mrb[0].mxu0 %vm283_vm0, %v448_v60 }
 0x31a   : > { %v551_v61 = vpop.f32.mrb[0].mxu1 }
 0x31b   : > { %560 = vrot.lane.b32.xlu1 %v551_v61, %s2391_s16  ;;  %v1619_v62 = vpop.f32.mrb[1].mxu1 }
 0x31c   : > { %v554_v63 = vpop.f32.mrb[2].mxu1 }
 0x31d   : > { %v1620_v5 = vpop.f32.mrb[3].mxu1 }
 0x31e   : > { %v492_v6 = vpop.f32.mrb[0].mxu0 }
 0x31f   : > { %v499_v8 = vadd.f32 %v492_v6, %v443_v4  ;;  %562 = vrot.lane.b32.xlu1 %v554_v63, %s2391_s16  ;;  %v1613_v9 = vpop.f32.mrb[1].mxu0 }
 0x320   : > { %v495_v10 = vpop.f32.mrb[2].mxu0 }
 0x321   : > { %1863 = vtanh.f32 %v499_v8  ;;  %v500_v11 = vadd.f32 %v495_v10, %v444_v7  ;;  %v1614_v12 = vpop.f32.mrb[3].mxu0  ;;  %v1515_v15 = vmul.f32 -1.442695, %v499_v8 }
 0x322   :  { %v1900_v12 = vld [vmem:[#allocation17] sm:$0xff] (%p427_p6)  }
 0x323   : > { %1865 = vtanh.f32 %v500_v11  ;;  %v1516_v16 = vmul.f32 -1.442695, %v500_v11  ;;  %1693 = vmatprep.subr.bf16.mxu1 (%p427_p6), %v1900_v12 }
 0x324   : > { %1867 = vpow2.f32 %v1515_v15  ;;  %1695 = vmatpush3.bf16.msra.mxu1 (%p427_p6), %v1900_v12 }
 0x325   : > { %1869 = vpow2.f32 %v1516_v16 }
 0x32b   : > { %v1864_v13 = vpop.eup %1863 }
 0x32c   : > { %586 = vrot.lane.b32.xlu0 %v1864_v13, %s2392_s17  ;;  %v1901_v13 = vld [vmem:[#allocation17 + $0x8] sm:$0xff] (%p427_p6)  }
 0x32d   : > { %v1866_v14 = vpop.eup %1865  ;;  %1694 = vmatprep.subr.bf16.mxu1 (%p427_p6), %v1901_v13 }
 0x32e   : > { %588 = vrot.lane.b32.xlu1 %v1866_v14, %s2392_s17  ;;  %v1868_v17 = vpop.eup %1867  ;;  %1696 = vmatpush3.bf16.msra.mxu1 (%p427_p6), %v1901_v13 }
 0x32f   : > { %v1870_v20 = vpop.eup %1869  ;;  %v574_v21 = vadd.f32 1.0, %v1868_v17 }
 0x330   : > { %v575_v24 = vadd.f32 1.0, %v1870_v20  ;;  %v1902_v20 = vld [vmem:[#allocation14] sm:$0xff] (%p427_p6)  }
 0x38d   : > { %v561_v19 = vpop.permute.xlu1 %560 }
 0x38e   : > { %v566_v22 = vadd.f32 %v561_v19, %v502_v18  ;;  %v2395_v19 = vmov (%p427_p6), 0.0  }
 0x38f   :  { %1621 = vmatprep.subr.bf16.mxu0 (%p427_p6), %v2395_v19  ;;  %1625 = vmatprep.mubr.msk.bf16.mxu0 (%p427_p6), %vm2396_vm4, %v2395_v19 }
 0x390   : > { %1871 = vtanh.f32 %v566_v22  ;;  %v1517_v35 = vmul.f32 -1.442695, %v566_v22  ;;  %1622 = vmatpush3.bf16.msra.mxu0 (%p427_p6), %v1902_v20 }
 0x391   : > { %v563_v25 = vpop.permute.xlu1 %562  ;;  %1873 = vrcp.f32 %v574_v21  ;;  %1623 = vmatprep.subr.bf16.mxu0 (%p427_p6), %v2395_v19 }
 0x392   : > { %v567_v26 = vadd.f32 %v563_v25, %v503_v23 }
 0x394   : > { %1875 = vtanh.f32 %v567_v26  ;;  %v1518_v36 = vmul.f32 -1.442695, %v567_v26  ;;  %1624 = vmatpush3.bf16.msra.mxu0 (%p427_p6), %v1903_v3 }
 0x395   : > { %1877 = vrcp.f32 %v575_v24  ;;  %1629 = vmatprep.subr.bf16.mxu0 (%p427_p6), %v1900_v12 }
 0x396   : > { %1879 = vpow2.f32 %v1517_v35 }
 0x397   : > { %1881 = vpow2.f32 %v1518_v36 }
 0x39a   : > { %v1872_v27 = vpop.eup %1871 }
 0x39b   : > { %634 = vrot.lane.b32.xlu0 %v1872_v27, %s2392_s17  ;;  %v1874_v28 = vpop.eup %1873 }
 0x39c   : > { %v582_v49 = vmul.f32 %v2328_v51, %v1874_v28 }
 0x39e   : > { %v1876_v29 = vpop.eup %1875  ;;  %v587_v30 = vpop.permute.xlu0 %586 }
 0x39f   : > { %v1878_v31 = vpop.eup %1877  ;;  %v592_v32 = vmul.f32 %v1874_v28, %v587_v30  ;;  %636 = vrot.lane.b32.xlu1 %v1876_v29, %s2392_s17 }
 0x3a0   : > { %v589_v33 = vpop.permute.xlu1 %588  ;;  %v1880_v37 = vpop.eup %1879  ;;  %v583_v53 = vmul.f32 %v2324_v50, %v1878_v31 }
 0x3a1   : > { %596 = vrot.lane.b32.xlu0 %v592_v32, %s2388_s6  ;;  %v593_v34 = vmul.f32 %v1878_v31, %v589_v33  ;;  %v622_v38 = vadd.f32 1.0, %v1880_v37  ;;  %v1882_v39 = vpop.eup %1881 }
 0x3a2   : > { %v623_v40 = vadd.f32 1.0, %v1882_v39 }
 0x3a3   : > { %598 = vrot.lane.b32.xlu1 %v593_v34, %s2388_s6  ;;  %1883 = vrcp.f32 %v622_v38 }
 0x3a4   : > { %1885 = vrcp.f32 %v623_v40 }
 0x3ad   : > { %v1884_v41 = vpop.eup %1883 }
 0x3ae   : > { %v1886_v44 = vpop.eup %1885 }
 0x3af   : > { %v631_v61 = vmul.f32 %v2308_v46, %v1886_v44 }
 0x40d   : > { %v635_v42 = vpop.permute.xlu0 %634 }
 0x40e   : > { %v640_v43 = vmul.f32 %v1884_v41, %v635_v42 }
 0x410   : > { %644 = vrot.lane.b32.xlu0 %v640_v43, %s2388_s6  ;;  %v1523_v43 = vld [vmem:[#allocation19] ss:$0 sm:$0xff] (%p427_p6) }
 0x411   : > { %v637_v45 = vpop.permute.xlu1 %636 }
 0x412   : > { %v641_v48 = vmul.f32 %v1886_v44, %v637_v45  ;;  %v2802_v45 = vld [vmem:[#allocation20 + $0x8] sm:$0xff] (%p427_p6) }
 0x413   : > { %v597_v52 = vpop.permute.xlu0 %596 }
 0x414   : > { %v2739_v51 = vadd.f32 %v597_v52, %v582_v49   ;;  %646 = vrot.lane.b32.xlu1 %v641_v48, %s2388_s6 }
 0x415   : > { %v599_v55 = vpop.permute.xlu1 %598 }
 0x416   : > { %v2926_v54 = vmov %v2739_v51  ;;  %v2744_v50 = vadd.f32 %v599_v55, %v583_v53   ;;  %v630_v51 = vmul.f32 %v2312_v47, %v1884_v41 }
 0x417   : > { %1887 = vtanh.f32 %v2926_v54 }
 0x418   : > { %v2927_v56 = vmov %v2744_v50 }
 0x419   : > { %1889 = vtanh.f32 %v2927_v56 }
 0x421   : > { %v1888_v57 = vpop.eup %1887 }
 0x422   : > { %608 = vrot.lane.b32.xlu0 %v1888_v57, %s2393_s23 }
 0x423   : > { %v1890_v58 = vpop.eup %1889 }
 0x424   : > { %610 = vrot.lane.b32.xlu1 %v1890_v58, %s2393_s23 }
 0x482   : > { %v645_v59 = vpop.permute.xlu0 %644 }
 0x483   : > { %v650_v60 = vadd.f32 %v645_v59, %v630_v51   ;;  %v2931_v51 = vmov %v2926_v54 }
 0x485   : > { %1891 = vtanh.f32 %v650_v60 }
 0x486   : > { %v647_v62 = vpop.permute.xlu1 %646 }
 0x487   : > { %v651_v63 = vadd.f32 %v647_v62, %v631_v61  }
 0x489   : > { %1893 = vtanh.f32 %v651_v63  ;;  %v1895_v11 = vpack.i.bf16 (%p427_p6), %v651_v63, %v650_v60 }
 0x48f   : > { %v1892_v50 = vpop.eup %1891 }
 0x490   : > { %656 = vrot.lane.b32.xlu0 %v1892_v50, %s2393_s23  ;;  %v2930_v50 = vmov %v2927_v56 }
 0x493   : > { %v1894_v4 = vpop.eup %1893 }
 0x494   : > { %v609_v5 = vpop.permute.xlu0 %608  ;;  %658 = vrot.lane.b32.xlu1 %v1894_v4, %s2393_s23 }
 0x495   : > { %v614_v53 = vmul.f32 %v1874_v28, %v609_v5  }
 0x496   : > { %v611_v6 = vpop.permute.xlu1 %610 }
 0x497   : > { %666 = vrot.lane.b32.xlu0 %v614_v53, %s2390_s9  ;;  %v615_v52 = vmul.f32 %v1878_v31, %v611_v6  }
 0x499   : > { %668 = vrot.lane.b32.xlu1 %v615_v52, %s2390_s9  ;;  %v2808_v52 = vld [vmem:[#allocation22] sm:$0xff] (%p427_p6) }
 0x502   : > { %v657_v46 = vpop.permute.xlu0 %656 }
 0x503   : > { %v662_v49 = vmul.f32 %v1884_v41, %v657_v46   ;;  %v2928_v46 = vmov %v651_v63 }
 0x505   : > { %677 = vrot.lane.b32.xlu0 %v662_v49, %s2393_s23  ;;  %v2806_v49 = vld [vmem:[#allocation20 + $0x18] sm:$0xff] (%p427_p6) }
 0x506   : > { %v659_v47 = vpop.permute.xlu1 %658 }
 0x507   : > { %v663_v48 = vmul.f32 %v1886_v44, %v659_v47   ;;  %v2929_v47 = vmov %v650_v60  ;;  %v2800_v44 = vld [vmem:[#allocation20] sm:$0xff] (%p427_p6) }
 0x509   : > { %v667_v7 = vpop.permute.xlu0 %666  ;;  %679 = vrot.lane.b32.xlu1 %v663_v48, %s2393_s23  ;;  %1896 = vrot.lane.b32.xlu0 (%p427_p6), %v1895_v11, %s2394_s20  ;;  %v2804_v48 = vld [vmem:[#allocation20 + $0x10] sm:$0xff] (%p427_p6) }
 0x50a   : > { %673 = vst.msk [vmem:[%s672_s25] sm:$0xff] %vm283_vm0, %v667_v7 }
 0x50b   : > { %v669_v8 = vpop.permute.xlu1 %668 }
 0x50c   : > { %674 = vst.msk [vmem:[%s672_s25 + $0x8] sm:$0xff] %vm283_vm0, %v669_v8 }
 0x576   :  { %429 = sbr.rel (!%p427_p6) target bundleno = 466 (0x1d2), region = 143 }
 0x577   : > { %v678_v9 = vpop.permute.xlu0 %677 }
 0x578   : > { %685 = vst.msk [vmem:[%s683_s4] sm:$0xff] %vm684_vm2, %v678_v9 }
 0x57b   : > { %v680_v10 = vpop.permute.xlu1 %679  ;;  %v1897_v31 = vpop.permute.xlu0 (%p427_p6), %1896 }
 0x57c   : > { %686 = vst.msk [vmem:[%s683_s4 + $0x8] sm:$0xff] %vm684_vm2, %v680_v10  ;;  %v1899_v34 = vunpack.i.h.bf16 (%p427_p6), %v1897_v31  ;;  %v1898_v35 = vunpack.i.l.bf16 (%p427_p6), %v1897_v31 }
 0x57e   :  { %v696_v36 = vsel %vm283_vm0, %v1899_v34, %v2927_v56  ;;  %v695_v37 = vsel %vm283_vm0, %v1898_v35, %v2926_v54 }
 0x57f   :  { %v697_v39 = vpack.c.bf16 %v696_v36, %v695_v37 }
 0x581   :  { %1626 = vmatmul.mubr.msk.bf16.vlgmr.msra.gmra.mrb[0].mxu0 %vm721_vm3, %v697_v39 }
 0x582   :  { %1630 = vmatpush3.bf16.msra.mxu0 %v1900_v12 }
 0x583   :  { %v770_v14 = vld [vmem:[#allocation3 + $0x20] sm:$0xff]  ;;  %v771_v15 = vld [vmem:[#allocation3 + $0x28] sm:$0xff]  ;;  %v772_v16 = vld [vmem:[#allocation3 + $0x30] sm:$0xff]  ;;  %1631 = vmatprep.subr.bf16.mxu0 %v1901_v13 }
 0x584   :  { %v784_v17 = vpack.c.bf16 %v771_v15, %v770_v14  ;;  %v773_v18 = vld [vmem:[#allocation3 + $0x38] sm:$0xff]  ;;  %v774_v0 = vld [vmem:[#allocation3 + $0x40] sm:$0xff]  ;;  %v775_v1 = vld [vmem:[#allocation3 + $0x48] sm:$0xff] }
 0x585   :  { %v785_v2 = vpack.c.bf16 %v773_v18, %v772_v16  ;;  %v786_v21 = vpack.c.bf16 %v775_v1, %v774_v0  ;;  %v776_v22 = vld [vmem:[#allocation3 + $0x50] sm:$0xff]  ;;  %v777_v23 = vld [vmem:[#allocation3 + $0x58] sm:$0xff]  ;;  %v778_v24 = vld [vmem:[#allocation3 + $0x60] sm:$0xff] }
 0x586   :  { %1637 = vmatprep.mubr.msk.bf16.mxu1 %vm721_vm3, %v784_v17  ;;  %v779_v25 = vld [vmem:[#allocation3 + $0x68] sm:$0xff]  ;;  %v787_v26 = vpack.c.bf16 %v777_v23, %v776_v22  ;;  %v780_v28 = vld [vmem:[#allocation3 + $0x70] sm:$0xff]  ;;  %v781_v29 = vld [vmem:[#allocation3 + $0x78] sm:$0xff]  ;;  %1632 = vmatpush3.bf16.msra.mxu0 %v1901_v13 }
 0x587   :  { %1638 = vmatmul.mubr.msk.bf16.vlgmr.msra.gmra.mrb[0].mxu1 %vm721_vm3, %v785_v2  ;;  %v788_v27 = vpack.c.bf16 %v779_v25, %v778_v24  ;;  %v789_v30 = vpack.c.bf16 %v781_v29, %v780_v28  ;;  %v766_v32 = vld [vmem:[#allocation3] sm:$0xff]  ;;  %v767_v33 = vld [vmem:[#allocation3 + $0x8] sm:$0xff]  ;;  %v768_v40 = vld [vmem:[#allocation3 + $0x10] sm:$0xff]  ;;  %v2830_v25 = vmov 0.0   ;;  %v2836_v28 = vmov 0.0  }
 0x588   :  { %1641 = vmatprep.mubr.msk.bf16.mxu1 %vm721_vm3, %v786_v21  ;;  %v782_v38 = vpack.c.bf16 %v767_v33, %v766_v32  ;;  %v769_v41 = vld [vmem:[#allocation3 + $0x18] sm:$0xff]  ;;  %v1519_v13 = vld [vmem:[#allocation16] ss:$0 sm:$0xff]  ;;  %v2838_v29 = vmov -1e+30  }
 0x589   :  { %v783_v42 = vpack.c.bf16 %v769_v41, %v768_v40 }
 0x58a   :  { %1633 = vmatprep.mubr.msk.bf16.mxu0 %vm721_vm3, %v782_v38 }
 0x58b   :  { %1634 = vmatmul.mubr.msk.bf16.vlgmr.msra.gmra.mrb[4].mxu0 %vm721_vm3, %v783_v42 }
 0x58f   :  { %1642 = vmatmul.mubr.msk.bf16.gmra.mrb[4].mxu1 %vm721_vm3, %v787_v26  ;;  %v2832_v26 = vmov 0.0  }
 0x590   :  { %1645 = vmatprep.mubr.msk.bf16.mxu1 %vm721_vm3, %v788_v27  ;;  %v2834_v27 = vmov 0.0  }
 0x597   :  { %1646 = vmatmul.mubr.msk.bf16.gmra.mrb[8].mxu1 %vm721_vm3, %v789_v30  ;;  %v2840_v30 = vmov -1e+30  }
 0x654   :  { %v759_v14 = vpop.f32.mrb[0].mxu0 }
 0x655   :  { %v2822_v15 = vadd.f32 %v1519_v13, %v759_v14  ;;  %v1627_v16 = vpop.f32.mrb[1].mxu0 }
 0x656   :  { %v762_v17 = vpop.f32.mrb[2].mxu0 }
 0x657   :  { %v2824_v18 = vadd.f32 %v1519_v13, %v762_v17  ;;  %v1628_v20 = vpop.f32.mrb[3].mxu0 }
 0x65a   :  { %v1639_v54 = vpop.f32.mrb[0].mxu1 }
 0x65b   :  { %v896_v53 = vadd.f32 %v1639_v54, %v1523_v43  ;;  %v887_v55 = vpop.f32.mrb[1].mxu1 }
 0x65c   :  { %v888_v56 = vadd.f32 %v1523_v43, %v887_v55  ;;  %v1640_v57 = vpop.f32.mrb[2].mxu1 }
 0x65d   :  { %941 = vst.msk [vmem:[#allocation4 + $0x30] sm:$0xff] %vm934_vm5, %v896_v53  ;;  %v899_v58 = vadd.f32 %v1640_v57, %v1523_v43  ;;  %v890_v51 = vpop.f32.mrb[3].mxu1 }
 0x65e   :  { %939 = vst.msk [vmem:[#allocation4 + $0x20] sm:$0xff] %vm934_vm5, %v888_v56  ;;  %v891_v59 = vadd.f32 %v1523_v43, %v890_v51  ;;  %v1635_v0 = vpop.f32.mrb[4].mxu0 }
 0x65f   :  { %942 = vst.msk [vmem:[#allocation4 + $0x38] sm:$0xff] %vm934_vm5, %v899_v58  ;;  %v880_v1 = vadd.f32 %v1635_v0, %v1523_v43  ;;  %v871_v2 = vpop.f32.mrb[5].mxu0 }
 0x660   :  { %940 = vst.msk [vmem:[#allocation4 + $0x28] sm:$0xff] %vm934_vm5, %v891_v59  ;;  %v872_v3 = vadd.f32 %v1523_v43, %v871_v2  ;;  %v1636_v21 = vpop.f32.mrb[6].mxu0 }
 0x661   :  { %937 = vst.msk [vmem:[#allocation4 + $0x10] sm:$0xff] %vm934_vm5, %v880_v1  ;;  %v883_v22 = vadd.f32 %v1636_v21, %v1523_v43  ;;  %v874_v23 = vpop.f32.mrb[7].mxu0 }
 0x662   :  { %v1643_v60 = vpop.f32.mrb[4].mxu1  ;;  %935 = vst.msk [vmem:[#allocation4] sm:$0xff] %vm934_vm5, %v872_v3  ;;  %v875_v24 = vadd.f32 %v1523_v43, %v874_v23 }
 0x663   :  { %v912_v61 = vadd.f32 %v1643_v60, %v1523_v43  ;;  %v903_v62 = vpop.f32.mrb[5].mxu1  ;;  %938 = vst.msk [vmem:[#allocation4 + $0x18] sm:$0xff] %vm934_vm5, %v883_v22 }
 0x664   :  { %v904_v63 = vadd.f32 %v1523_v43, %v903_v62  ;;  %v1644_v50 = vpop.f32.mrb[6].mxu1  ;;  %936 = vst.msk [vmem:[#allocation4 + $0x8] sm:$0xff] %vm934_vm5, %v875_v24 }
 0x665   :  { %945 = vst.msk [vmem:[#allocation4 + $0x50] sm:$0xff] %vm934_vm5, %v912_v61  ;;  %v915_v4 = vadd.f32 %v1644_v50, %v1523_v43  ;;  %v906_v5 = vpop.f32.mrb[7].mxu1 }
 0x666   :  { %943 = vst.msk [vmem:[#allocation4 + $0x40] sm:$0xff] %vm934_vm5, %v904_v63  ;;  %v907_v6 = vadd.f32 %v1523_v43, %v906_v5 }
 0x667   :  { %946 = vst.msk [vmem:[#allocation4 + $0x58] sm:$0xff] %vm934_vm5, %v915_v4 }
 0x668   :  { %944 = vst.msk [vmem:[#allocation4 + $0x48] sm:$0xff] %vm934_vm5, %v907_v6 }
 0x66a   :  { %v1647_v46 = vpop.f32.mrb[8].mxu1 }
 0x66b   :  { %v928_v47 = vadd.f32 %v1647_v46, %v1523_v43  ;;  %v919_v7 = vpop.f32.mrb[9].mxu1 }
 0x66c   :  { %v920_v8 = vadd.f32 %v1523_v43, %v919_v7  ;;  %v1648_v9 = vpop.f32.mrb[10].mxu1 }
 0x66d   :  { %949 = vst.msk [vmem:[#allocation4 + $0x70] sm:$0xff] %vm934_vm5, %v928_v47  ;;  %v931_v10 = vadd.f32 %v1648_v9, %v1523_v43  ;;  %v922_v11 = vpop.f32.mrb[11].mxu1 }
 0x66e   :  { %947 = vst.msk [vmem:[#allocation4 + $0x60] sm:$0xff] %vm934_vm5, %v920_v8  ;;  %v923_v12 = vadd.f32 %v1523_v43, %v922_v11 }
 0x66f   :  { %950 = vst.msk [vmem:[#allocation4 + $0x78] sm:$0xff] %vm934_vm5, %v931_v10 }
 0x670   :  { %948 = vst.msk [vmem:[#allocation4 + $0x68] sm:$0xff] %vm934_vm5, %v923_v12 }
 0x671 LB: > { %v1683_v31 = vpack.c.bf16 %v2802_v45, %v2800_v44  ;;  %v1687_v32 = vpack.c.bf16 %v2806_v49, %v2804_v48  ;;  %1660 = vmatprep.subr.mxu1 %v2808_v52  ;;  %s1534_s1 = sshll.u32 %s2368_s8, 4  ;;  %s2397_s28 = smov 96   ;;  %vm1073_vm6 = vcmask 64512   ;;  %s2368_s8 = sphi %s2842_s8, %s961_s8   ;;  %v2364_v30 = vphi %v2840_v30, %v2937_v30   ;;  %v2360_v29 = vphi %v2838_v29, %v2936_v29   ;;  %v2356_v28 = vphi %v2836_v28, %v2935_v28   ;;  %v2352_v27 = vphi %v2834_v27, %v2934_v27   ;;  %v2348_v26 = vphi %v2832_v26, %v2933_v26   ;;  %v2344_v25 = vphi %v2830_v25, %v2932_v25  }
 0x672   : > { %1661 = vmatpush3.msra.mxu1 %v2808_v52  ;;  %s969_s21 = scalar_lea.vmem [#allocation4], %s1534_s1  ;;  %s961_s8 = sadd.s32 1, %s2368_s8  }
 0x673   : > { %1684 = vmatprep.subr.bf16.mxu0 %v1683_v31  ;;  %1665 = vmatprep.subr.mxu1 %v2808_v52  ;;  %p958_p7 = scmp.ge.s32.totalorder %s961_s8, 8  }
 0x674   : > { %1686 = vmatpush3.bf16.msra.mxu0 %v1683_v31  ;;  %v1912_v14 = vld [vmem:[#allocation23] sm:$0xff] (%p958_p7)   ;;  %v1913_v16 = vld [vmem:[#allocation23 + $0x8] sm:$0xff] (%p958_p7)   ;;  %s2398_s18 = smov (%p958_p7), [#allocation26]  }
 0x675   : > { %1688 = vmatprep.subr.bf16.mxu0 %v1687_v32  ;;  %s1411_s27 = sshll.u32 (%p958_p7), %s2398_s18, 4  ;;  %s1412_s27 = int_to_ptr.vmem [resolvable:$true] %s1411_s27 }
 0x676   :  { %s2204_s11 = scalar_lea.vmem (%p958_p7), %s1412_s27, 256  ;;  %p2209_p9 = scmp.lt.s32.totalorder (%p958_p7), %s1412_s27, %s1412_s27 }
 0x677   : > { %v970_v33 = vld [vmem:[%s969_s21] sm:$0xff]  ;;  %v971_v34 = vld [vmem:[%s969_s21 + $0x8] sm:$0xff]  ;;  %p2205_p8 = scmp.ne.s32.totalorder (%p958_p7), %s1412_s27, %s2204_s11  ;;  %p2210_p10 = scmp.lt.s32.totalorder (%p958_p7), %s2204_s11, %s2204_s11 }
 0x678   : > { %v972_v35 = vmul.f32 %v970_v33, %v2822_v15  ;;  %v973_v36 = vmul.f32 %v971_v34, %v2824_v18  ;;  %1690 = vmatpush3.bf16.msra.mxu0 %v1687_v32  ;;  %1240 = vrot.lane.b32.xlu0 %v970_v33, %s2397_s28  ;;  %v1543_v18 = vld [vmem:[#allocation25] ss:$0 sm:$0xff] (%p958_p7) }
 0x679   :  { %1670 = vmatprep.subr.mxu0 (%p958_p7), %v2808_v52  ;;  %p2211_p11 = por (%p958_p7), %p2210_p10, %p2209_p9 }
 0x67a   : > { %1657 = vmatprep.mubr.msk.f32.mxu0 %vm721_vm3, %v972_v35 }
 0x67b   : > { %1658 = vmatmul.mubr.msk.f32.vlgmr.msra.gmra.mrb[0].mxu0 %vm721_vm3, %v973_v36  ;;  %p2212_p12 = pnand (%p958_p7), %p2211_p11, %p2205_p8 }
 0x67c   : > { %1242 = vrot.lane.b32.xlu0 %v971_v34, %s2397_s28  ;;  %1671 = vmatpush3.msra.mxu0 (%p958_p7), %v2808_v52 }
 0x6ea   : > { %v1241_v4 = vpop.permute.xlu0 %1240 }
 0x6ee   : > { %v1243_v46 = vpop.permute.xlu0 %1242 }
 0x74e   : > { %v1659_v37 = vpop.f32.mrb[0].mxu0 }
 0x74f   : > { %v1056_v38 = vmax.f32 %v2360_v29, %v1659_v37   ;;  %v1046_v39 = vpop.f32.mrb[1].mxu0 }
 0x750   : > { %v1055_v40 = vmax.f32 %v2364_v30, %v1046_v39  }
 0x751   : > { %v1058_v41 = vsub.f32 %v2360_v29, %v1056_v38  ;;  %v1064_v42 = vsub.f32 %v1659_v37, %v1056_v38  ;;  %v2936_v29 = vmov %v1056_v38 }
 0x752   : > { %v1057_v43 = vsub.f32 %v2364_v30, %v1055_v40  ;;  %v1063_v54 = vsub.f32 %v1046_v39, %v1055_v40  ;;  %v2937_v30 = vmov %v1055_v40 }
 0x753   : > { %v1061_v53 = vmul.f32 1.442695, %v1058_v41  ;;  %v1067_v55 = vmul.f32 1.442695, %v1064_v42 }
 0x754   : > { %v1059_v56 = vmul.f32 1.442695, %v1057_v43  ;;  %v1065_v57 = vmul.f32 1.442695, %v1063_v54 }
 0x755   : > { %1904 = vpow2.f32 %v1061_v53 }
 0x756   : > { %1906 = vpow2.f32 %v1067_v55 }
 0x757   : > { %1908 = vpow2.f32 %v1059_v56 }
 0x758   : > { %1910 = vpow2.f32 %v1065_v57 }
 0x75f   : > { %v1905_v58 = vpop.eup %1904 }
 0x760   : > { %v1907_v51 = vpop.eup %1906  ;;  %v1070_v59 = vmul.f32 %v2352_v27, %v1905_v58 }
 0x761   : > { %v1909_v60 = vpop.eup %1908 }
 0x762   : > { %v1072_v61 = vadd.f32 %v1907_v51, %v1070_v59   ;;  %v1069_v62 = vmul.f32 %v2356_v28, %v1909_v60  ;;  %1662 = vmatprep.mubr.msk.f32.mxu1 %vm1073_vm6, %v1909_v60  ;;  %v1911_v63 = vpop.eup %1910 }
 0x763   : > { %1663 = vmatmul.mubr.msk.f32.vlgmr.msra.gmra.mrb[0].mxu1 %vm1073_vm6, %v1905_v58 }
 0x764   : > { %v1071_v50 = vadd.f32 %v1911_v63, %v1069_v62   ;;  %1666 = vmatpush3.msra.mxu1 %v2808_v52  ;;  %1667 = vmatprep.mubr.msk.f32.mxu1 %vm1073_vm6, %v1911_v63  ;;  %v2934_v27 = vmov %v1072_v61 }
 0x765   :  { %1675 = vmatprep.subr.bf16.mxu1 (%p958_p7), %v2395_v19 }
 0x766   : > { %v2935_v28 = vmov %v1071_v50  ;;  %1672 = vmatprep.mubr.msk.f32.mxu0 (%p958_p7), %vm1073_vm6, %v1071_v50 }
 0x767   : > { %1668 = vmatmul.mubr.msk.f32.vlgmr.msra.gmra.mrb[2].mxu1 %vm1073_vm6, %v1907_v51  ;;  %1673 = vmatmul.mubr.msk.f32.vlgmr.msra.gmra.mrb[0].mxu0 (%p958_p7), %vm1073_vm6, %v1072_v61 }
 0x768   :  { %1679 = vmatprep.mubr.msk.bf16.mxu1 (%p958_p7), %vm2396_vm4, %v2395_v19  ;;  %1676 = vmatpush3.bf16.msra.mxu1 (%p958_p7), %v1912_v14 }
 0x769   :  { %1677 = vmatprep.subr.bf16.mxu1 (%p958_p7), %v2395_v19 }
 0x76c   :  { %1678 = vmatpush3.bf16.msra.mxu1 (%p958_p7), %v1913_v16 }
 0x836   : > { %v1664_v5 = vpop.f32.mrb[0].mxu1 }
 0x837   : > { %v1146_v6 = vpop.f32.mrb[1].mxu1  ;;  %v1156_v7 = vmul.f32 %v2344_v25, %v1664_v5 }
 0x838   : > { %v1155_v10 = vmul.f32 %v2348_v26, %v1146_v6 }
 0x83a   : > { %v1669_v47 = vpop.f32.mrb[2].mxu1  ;;  %960 = sbr.rel (!%p958_p7) target bundleno = 1649 (0x671), region = 154  ;;  %v1674_v17 = vpop.f32.mrb[0].mxu0 (%p958_p7) }
 0x83b   : > { %v1247_v8 = vmul.f32 %v1669_v47, %v1243_v46  ;;  %v1229_v9 = vpop.f32.mrb[3].mxu1  ;;  %1914 = vrcp.f32 (%p958_p7), %v1674_v17  ;;  %v1323_v44 = vpop.f32.mrb[1].mxu0 (%p958_p7) }
 0x83c   : > { %v1246_v11 = vmul.f32 %v1241_v4, %v1229_v9  ;;  %1916 = vrcp.f32 (%p958_p7), %v1323_v44 }
 0x83d   : > { %v1249_v12 = vadd.f32 %v1247_v8, %v1156_v7  }
 0x83e   : > { %v1248_v13 = vadd.f32 %v1246_v11, %v1155_v10  }
 0x83f   : > { %v2932_v25 = vmov %v1249_v12 }
 0x840   : > { %v2933_v26 = vmov %v1248_v13 }
 0x845   :  { %v1915_v45 = vpop.eup %1914 }
 0x846   :  { %v1917_v48 = vpop.eup %1916  ;;  %v1335_v49 = vmul.f32 %v1915_v45, %v1249_v12 }
 0x847   :  { %v1334_v52 = vmul.f32 %v1917_v48, %v1248_v13 }
 0x849   :  { %v1336_v15 = vpack.c.bf16 %v1335_v49, %v1334_v52 }
 0x84b   :  { %1680 = vmatmul.mubr.msk.bf16.vlgmr.msra.gmra.mrb[0].mxu1 %vm721_vm3, %v1336_v15 }
 0x91e   :  { %v1397_v20 = vpop.f32.mrb[0].mxu1 }
 0x91f   :  { %v1398_v0 = vadd.f32 %v1543_v18, %v1397_v20  ;;  %v1681_v1 = vpop.f32.mrb[1].mxu1 }
 0x920   :  { %v1400_v19 = vpop.f32.mrb[2].mxu1 }
 0x921   :  { %1404 = vst [vmem:[#allocation26] sm:$0xff] %v1398_v0  ;;  %v1401_v2 = vadd.f32 %v1543_v18, %v1400_v19  ;;  %v1682_v3 = vpop.f32.mrb[3].mxu1 }
 0x923   :  { %1405 = vst [vmem:[#allocation26 + $0x8] sm:$0xff] %v1401_v2 }
 0x924   :  { %2215 = shalt.err (!%p2212_p12)
}
 0x925   :  { %s2216_s3 = scalar_lea.hbm %s2925_s13, 256 }
 0x926   :  { %p2217_p13 = scmp.ne.s32.totalorder %s2925_s13, %s2216_s3  ;;  %p2220_p0 = scmp.lt.u32.totalorder %s2216_s3, %s2925_s13 }
 0x928   :  { %p2222_p1 = pnand %p2220_p0, %p2217_p13 }
 0x92a   :  { %2225 = shalt.err (!%p2222_p1)
}
 0x92b   :  { %1417 = dma.vmem_to_hbm [thread:$0]  %s1412_s27, 256, %s2925_s13, [#allocation7], %s2377_s7, %s2377_s7, %s2378_s22  }
 0x92c   :  { %2304 = dma.done.wait [#allocation7], 256  }
 0x92d   :  { %2305 = vsyncadd [#allocation7], 4294967040 }
 0x92e   :  { %1421 = vsyncpa [#allocation6], 1 }
 0x92f   :  { %1422 = vsyncpa [#allocation9], 1 }
 0x930   :  { %1423 = vsyncpa [#allocation12], 1 }
 0x931   :  { %1424 = vsyncpa [#allocation15], 1 }
 0x932   :  { %1425 = vsyncpa [#allocation18], 1 }
 0x933   :  { %1426 = vsyncpa [#allocation21], 1 }
 0x934   :  { %1427 = vsyncpa [#allocation24], 1 }
 0x935   :  { %1428 = vsyncpa [#allocation7], 1 }

</bundles_post_ra>
